<compile_context>
chip_gen: v6e
topology: v6e:2x2x1
jax: 0.10.0
libtpu: 0.0.40
codegen_flags: <defaults>
</compile_context>

<pallas_src>
import functools

import jax
import jax.numpy as jnp
from jax.experimental import pallas as pl
from jax.experimental.pallas import tpu as pltpu


# ------------------------- model hyperparameters (small) ---------------------
NUM_LAYERS  = 4      # dilations 1, 2, 4, 8
NUM_F_MAPS  = 32     # F
DIM         = 16     # input feature dim
NUM_CLASSES = 8
T_LEN       = 128    # sequence length (lane-aligned; must exceed max dilation)
BATCH       = 2


# ------------------------------- Pallas kernel -------------------------------
def _ssm_kernel(x_ref, masks_ref, wb_ref, bb_ref, out1_ref, feat_ref,
                *, num_layers):
    """One batch group per grid step, NCT layout (channels x folded time).

    x_ref     : (1, D, GT)        f32 input features (GT = G * T)
    masks_ref : (1, 1+2L, GT)     f32; row 0 = user mask row, rows 1+2l / 2+2l =
                                  left/right dilation boundary masks (local time)
    wb_ref    : (R, W)            f32 packed weights:
                                  [0:F, 0:D]            w_in   (F, D)
                                  [F + 3F*l : ..., 0:F] w_dil fused taps (3F, F)
                                  [F+3FL + F*l : ...,:] w_pw   (F, F)
                                  [F+3FL+FL : +C, 0:F]  w_out  (C, F)
    bb_ref    : (RB, 1)           f32 packed biases: b_in | b_dil | b_pw | b_out
    out1_ref  : (1, C, GT)        logits
    feat_ref  : (1, F, GT)        final features
    """
    x = x_ref[0]                         # (D, GT) f32
    mk = masks_ref[0]                    # (1+2L, GT) f32
    d_in, gt = x.shape
    f = feat_ref.shape[1]
    c = out1_ref.shape[1]

    m = mk[0:1]                          # (1, GT) user mask row
    m_b = jnp.broadcast_to(m, (f, gt))   # hoisted out of the unrolled layer loop

    # static row offsets into the packed blobs (free .at-style slicing)
    WD = f
    WP = WD + 3 * f * num_layers
    WO = WP + f * num_layers
    BD = f
    BP = BD + f * num_layers
    BO = BP + f * num_layers

    # input 1x1 conv == (F, D) @ (D, GT) channel matmul (f32 on the MXU)
    feat = jnp.dot(wb_ref[0:f, 0:d_in], x,
                   preferred_element_type=jnp.float32) + bb_ref[0:f, :]   # (F, GT)

    for l in range(num_layers):
        d = 2 ** l
        # Fused 3-tap dilated conv: one (3F, F) @ (F, GT) MXU push per layer.
        y = jnp.dot(wb_ref[WD + 3 * f * l: WD + 3 * f * (l + 1), 0:f], feat,
                    preferred_element_type=jnp.float32)                  # (3F, GT)
        y0 = y[0 * f:1 * f]     # tap k=0 -> contributes at t from t-d
        y1 = y[1 * f:2 * f]     # tap k=1 -> center
        y2 = y[2 * f:3 * f]     # tap k=2 -> contributes at t from t+d
        # Shift the matmul OUTPUTS in time: circular XLU roll + precomputed
        # local-time boundary mask (zero-pad semantics, no cross-batch leakage).
        left = pltpu.roll(y0, shift=d, axis=1) * mk[1 + 2 * l: 2 + 2 * l]
        right = pltpu.roll(y2, shift=gt - d, axis=1) * mk[2 + 2 * l: 3 + 2 * l]
        h = jnp.maximum(left + y1 + right
                        + bb_ref[BD + f * l: BD + f * (l + 1), :], 0.0)   # bias+ReLU
        # 1x1 conv
        h = jnp.dot(wb_ref[WP + f * l: WP + f * (l + 1), 0:f], h,
                    preferred_element_type=jnp.float32) \
            + bb_ref[BP + f * l: BP + f * (l + 1), :]
        # Dropout == identity (eval)
        feat = (feat + h) * m_b                                           # residual

    out1 = (jnp.dot(wb_ref[WO:WO + c, 0:f], feat,
                    preferred_element_type=jnp.float32)
            + bb_ref[BO:BO + c, :]) * m

    out1_ref[0] = out1
    feat_ref[0] = feat


# ------------------------------- wrapper --------------------------------------
def single_stage_model(x_nct, mask_nct, params, group=None):
    """x_nct: (N, dim, T) f32; mask_nct: (N, Cm, T) f32 (PyTorch NCT layout).

    Returns (out1, out) in PyTorch layout: (N, num_classes, T), (N, F, T).
    """
    n, d_in, t = x_nct.shape
    f = params["w_in"].shape[0]
    c = params["w_out"].shape[0]
    num_layers = params["w_dil"].shape[0]

    # --- batch-fold factor G: fold batch into lanes, but keep the grid >= 2 so
    #     both TensorCores stay busy on v7x.  (N=2 -> G=1; N=4 -> G=2; ...)
    if group is None:
        group = 1
        for cand in range(min(n, 8), 0, -1):
            if n % cand == 0 and n // cand >= 2:
                group = cand
                break
    g = group
    assert n % g == 0
    ng = n // g
    gt = g * t

    def fold(a):                               # (N, C, T) -> (N/G, C, G*T)
        ch = a.shape[1]
        return a.reshape(ng, g, ch, t).transpose(0, 2, 1, 3).reshape(ng, ch, gt)

    def unfold(a):                             # (N/G, C, G*T) -> (N, C, T)
        ch = a.shape[1]
        return a.reshape(ng, ch, g, t).transpose(0, 2, 1, 3).reshape(n, ch, t)

    x_f = fold(x_nct)                                              # (NG, D, GT)
    mask_row = fold(mask_nct[:, 0:1, :])                           # (NG, 1, GT)

    # --- per-layer dilation boundary masks on the LOCAL time index ------------
    lt = jnp.arange(gt, dtype=jnp.int32) % t
    bnd = []
    for l in range(num_layers):
        d = 2 ** l
        bnd.append((lt >= d).astype(jnp.float32))        # left-tap valid
        bnd.append((lt < t - d).astype(jnp.float32))     # right-tap valid
    bnd = jnp.broadcast_to(jnp.stack(bnd)[None], (ng, 2 * num_layers, gt))
    masks = jnp.concatenate([mask_row, bnd], axis=1)               # (NG, 1+2L, GT)

    # --- pack weights into one f32 blob (fewer prologue DMAs); fuse the 3 taps
    w_cols = max(d_in, f)

    def padw(a):
        return jnp.pad(a, ((0, 0), (0, w_cols - a.shape[1])))

    w_dil = jnp.transpose(params["w_dil"], (0, 3, 1, 2)) \
               .reshape(num_layers, 3 * f, f)                      # (L, 3F, F)
    wblob = jnp.concatenate(
        [padw(params["w_in"]),                                     # (F, W)
         padw(w_dil.reshape(num_layers * 3 * f, f)),               # (3FL, W)
         padw(params["w_pw"].reshape(num_layers * f, f)),          # (FL, W)
         padw(params["w_out"])], axis=0).astype(jnp.float32)       # (C, W)

    bblob = jnp.concatenate(
        [params["b_in"],
         params["b_dil"].reshape(num_layers * f, 1),
         params["b_pw"].reshape(num_layers * f, 1),
         params["b_out"]], axis=0).astype(jnp.float32)             # (RB, 1)

    full = lambda a: pl.BlockSpec(a.shape, lambda b, nd=a.ndim: (0,) * nd)
    kernel = functools.partial(_ssm_kernel, num_layers=num_layers)

    out1_f, feat_f = pl.pallas_call(
        kernel,
        out_shape=(jax.ShapeDtypeStruct((ng, c, gt), jnp.float32),
                   jax.ShapeDtypeStruct((ng, f, gt), jnp.float32)),
        grid_spec=pltpu.PrefetchScalarGridSpec(
            num_scalar_prefetch=0,
            grid=(ng,),
            in_specs=[
                pl.BlockSpec((1, d_in, gt), lambda b: (b, 0, 0)),
                pl.BlockSpec((1, 1 + 2 * num_layers, gt), lambda b: (b, 0, 0)),
                full(wblob),
                full(bblob),
            ],
            out_specs=[
                pl.BlockSpec((1, c, gt), lambda b: (b, 0, 0)),
                pl.BlockSpec((1, f, gt), lambda b: (b, 0, 0)),
            ],
        ),
        compiler_params=pltpu.CompilerParams(
            dimension_semantics=("parallel",)),   # shards batch groups across TCs
    )(x_f, masks, wblob, bblob)

    return unfold(out1_f), unfold(feat_f)


# --------------------------- pure-JAX reference (f32) -------------------------
def reference(x, mask, params):
    """x: (N, D, T), mask: (N, Cm, T). Mirrors the PyTorch module in f32."""
    n, _, t = x.shape
    m = mask[:, 0:1, :]                                            # (N, 1, T)
    num_layers = params["w_dil"].shape[0]

    feat = jnp.einsum("fd,ndt->nft", params["w_in"], x) + params["b_in"][None]
    for l in range(num_layers):
        d = 2 ** l
        wl = params["w_dil"][l]                                    # (F, F, 3)
        fp = jnp.pad(feat, ((0, 0), (0, 0), (d, d)))
        h = (jnp.einsum("oc,nct->not", wl[:, :, 0], fp[:, :, 0:t])
             + jnp.einsum("oc,nct->not", wl[:, :, 1], fp[:, :, d:d + t])
             + jnp.einsum("oc,nct->not", wl[:, :, 2], fp[:, :, 2 * d:2 * d + t])
             + params["b_dil"][l][None])
        h = jax.nn.relu(h)
        h = jnp.einsum("oc,nct->not", params["w_pw"][l], h) + params["b_pw"][l][None]
        feat = (feat + h) * m
    out1 = (jnp.einsum("of,nft->not", params["w_out"], feat)
            + params["b_out"][None]) * m
    return out1, feat


# ------------------------------ parameter init --------------------------------
def init_params(key):
    """Parameters in PyTorch Conv1d layout (out_channels, in_channels[, k])."""
    ks = jax.random.split(key, 8)
    s = 0.1
    return {
        "w_in":  s * jax.random.normal(ks[0], (NUM_F_MAPS, DIM), jnp.float32),
        "b_in":  s * jax.random.normal(ks[1], (NUM_F_MAPS, 1), jnp.float32),
        "w_dil": s * jax.random.normal(ks[2], (NUM_LAYERS, NUM_F_MAPS, NUM_F_MAPS, 3), jnp.float32),
        "b_dil": s * jax.random.normal(ks[3], (NUM_LAYERS, NUM_F_MAPS, 1), jnp.float32),
        "w_pw":  s * jax.random.normal(ks[4], (NUM_LAYERS, NUM_F_MAPS, NUM_F_MAPS), jnp.float32),
        "b_pw":  s * jax.random.normal(ks[5], (NUM_LAYERS, NUM_F_MAPS, 1), jnp.float32),
        "w_out": s * jax.random.normal(ks[6], (NUM_CLASSES, NUM_F_MAPS), jnp.float32),
        "b_out": s * jax.random.normal(ks[7], (NUM_CLASSES, 1), jnp.float32),
    }


if __name__ == "__main__":
    key = jax.random.PRNGKey(0)
    kx, km, kp = jax.random.split(key, 3)

    # PyTorch-style inputs: x (N, dim, T), mask (N, num_classes, T)
    x = jax.random.normal(kx, (BATCH, DIM, T_LEN), jnp.float32)
    # binary mask, same value along channel dim (only [:, 0:1, :] is used)
    mask_row = (jax.random.uniform(km, (BATCH, 1, T_LEN)) > 0.2).astype(jnp.float32)
    mask = jnp.tile(mask_row, (1, NUM_CLASSES, 1))

    params = init_params(kp)

    out1, out = jax.block_until_ready(single_stage_model(x, mask, params))

    # sanity check against pure-JAX f32 reference (tolerance covers any
    # MXU default-precision differences between kernel and reference paths)
    ref1, ref_feat = reference(x, mask, params)
    assert out1.shape == (BATCH, NUM_CLASSES, T_LEN)
    assert out.shape == (BATCH, NUM_F_MAPS, T_LEN)
    assert jnp.max(jnp.abs(out1 - ref1)) < 5e-2
    assert jnp.max(jnp.abs(out - ref_feat)) < 5e-2

    print("KERNEL_OK")
</pallas_src>

<mosaic_0001>
module attributes {stable_mosaic.version = 11 : i64} {
  func.func @_ssm_kernel(%arg0: i32, %arg1: memref<1x16x128xf32, #tpu.memory_space<vmem>>, %arg2: memref<1x9x128xf32, #tpu.memory_space<vmem>>, %arg3: memref<552x32xf32, #tpu.memory_space<vmem>>, %arg4: memref<296x1xf32, #tpu.memory_space<vmem>>, %arg5: memref<1x8x128xf32, #tpu.memory_space<vmem>>, %arg6: memref<1x32x128xf32, #tpu.memory_space<vmem>>) attributes {dimension_semantics = [#tpu.dimension_semantics<parallel>], iteration_bounds = array<i64: 2>, scalar_prefetch = 0 : i64, scratch_operands = 0 : i64, tpu.core_type = #tpu.core_type<tc>, window_params = [{transform_indices = @transform_0, window_bounds = array<i64: 1, 16, 128>}, {transform_indices = @transform_1, window_bounds = array<i64: 1, 9, 128>}, {pipeline_mode = #tpu.pipeline_mode<synchronous>, transform_indices = @transform_2, window_bounds = array<i64: 552, 32>}, {pipeline_mode = #tpu.pipeline_mode<synchronous>, transform_indices = @transform_3, window_bounds = array<i64: 296, 1>}, {transform_indices = @transform_4, window_bounds = array<i64: 1, 8, 128>}, {transform_indices = @transform_5, window_bounds = array<i64: 1, 32, 128>}]} {
    %c0 = arith.constant 0 : index
    %c0_0 = arith.constant 0 : index
    %c0_1 = arith.constant 0 : index
    %0 = vector.load %arg1[%c0, %c0_0, %c0_1] : memref<1x16x128xf32, #tpu.memory_space<vmem>>, vector<1x16x128xf32>
    %1 = vector.shape_cast %0 : vector<1x16x128xf32> to vector<16x128xf32>
    %c0_2 = arith.constant 0 : index
    %c0_3 = arith.constant 0 : index
    %c0_4 = arith.constant 0 : index
    %2 = vector.load %arg2[%c0_2, %c0_3, %c0_4] : memref<1x9x128xf32, #tpu.memory_space<vmem>>, vector<1x9x128xf32>
    %3 = vector.shape_cast %2 : vector<1x9x128xf32> to vector<9x128xf32>
    %4 = vector.extract_strided_slice %3 {offsets = [0, 0], sizes = [1, 128], strides = [1, 1]} : vector<9x128xf32> to vector<1x128xf32>
    %5 = vector.shape_cast %4 : vector<1x128xf32> to vector<1x128xf32>
    %6 = vector.broadcast %5 : vector<1x128xf32> to vector<32x128xf32>
    %c0_5 = arith.constant 0 : index
    %c0_6 = arith.constant 0 : index
    %7 = vector.load %arg3[%c0_5, %c0_6] : memref<552x32xf32, #tpu.memory_space<vmem>>, vector<32x16xf32>
    %cst = arith.constant dense<0.000000e+00> : vector<32x128xf32>
    %8 = tpu.matmul %7, %1, %cst {dimension_numbers = #tpu.dot_dimension_numbers<[1], [0], [0], [1], [0, 0, 1, 1], [], []>} : vector<32x16xf32>, vector<16x128xf32>, vector<32x128xf32> -> vector<32x128xf32>
    %c0_7 = arith.constant 0 : index
    %c0_8 = arith.constant 0 : index
    %9 = vector.load %arg4[%c0_7, %c0_8] : memref<296x1xf32, #tpu.memory_space<vmem>>, vector<32x1xf32>
    %10 = vector.broadcast %9 : vector<32x1xf32> to vector<32x128xf32>
    %11 = arith.addf %8, %10 : vector<32x128xf32>
    %c32 = arith.constant 32 : index
    %c0_9 = arith.constant 0 : index
    %12 = vector.load %arg3[%c32, %c0_9] : memref<552x32xf32, #tpu.memory_space<vmem>>, vector<96x32xf32>
    %cst_10 = arith.constant dense<0.000000e+00> : vector<96x128xf32>
    %13 = tpu.matmul %12, %11, %cst_10 {dimension_numbers = #tpu.dot_dimension_numbers<[1], [0], [0], [1], [0, 0, 1, 1], [], []>} : vector<96x32xf32>, vector<32x128xf32>, vector<96x128xf32> -> vector<96x128xf32>
    %14 = vector.extract_strided_slice %13 {offsets = [0, 0], sizes = [32, 128], strides = [1, 1]} : vector<96x128xf32> to vector<32x128xf32>
    %15 = vector.extract_strided_slice %13 {offsets = [32, 0], sizes = [32, 128], strides = [1, 1]} : vector<96x128xf32> to vector<32x128xf32>
    %16 = vector.extract_strided_slice %13 {offsets = [64, 0], sizes = [32, 128], strides = [1, 1]} : vector<96x128xf32> to vector<32x128xf32>
    %c1_i32 = arith.constant 1 : i32
    %17 = tpu.dynamic_rotate %14 by %c1_i32 dim 1 : vector<32x128xf32>, i32 -> vector<32x128xf32>
    %18 = vector.extract_strided_slice %3 {offsets = [1, 0], sizes = [1, 128], strides = [1, 1]} : vector<9x128xf32> to vector<1x128xf32>
    %19 = vector.broadcast %18 : vector<1x128xf32> to vector<32x128xf32>
    %20 = arith.mulf %17, %19 : vector<32x128xf32>
    %c127_i32 = arith.constant 127 : i32
    %21 = tpu.dynamic_rotate %16 by %c127_i32 dim 1 : vector<32x128xf32>, i32 -> vector<32x128xf32>
    %22 = vector.extract_strided_slice %3 {offsets = [2, 0], sizes = [1, 128], strides = [1, 1]} : vector<9x128xf32> to vector<1x128xf32>
    %23 = vector.broadcast %22 : vector<1x128xf32> to vector<32x128xf32>
    %24 = arith.mulf %21, %23 : vector<32x128xf32>
    %25 = arith.addf %20, %15 : vector<32x128xf32>
    %26 = arith.addf %25, %24 : vector<32x128xf32>
    %c32_11 = arith.constant 32 : index
    %c0_12 = arith.constant 0 : index
    %27 = vector.load %arg4[%c32_11, %c0_12] : memref<296x1xf32, #tpu.memory_space<vmem>>, vector<32x1xf32>
    %28 = vector.broadcast %27 : vector<32x1xf32> to vector<32x128xf32>
    %29 = arith.addf %26, %28 : vector<32x128xf32>
    %cst_13 = arith.constant 0.000000e+00 : f32
    %30 = vector.broadcast %cst_13 : f32 to vector<32x128xf32>
    %31 = arith.maximumf %29, %30 : vector<32x128xf32>
    %c416 = arith.constant 416 : index
    %c0_14 = arith.constant 0 : index
    %32 = vector.load %arg3[%c416, %c0_14] : memref<552x32xf32, #tpu.memory_space<vmem>>, vector<32x32xf32>
    %cst_15 = arith.constant dense<0.000000e+00> : vector<32x128xf32>
    %33 = tpu.matmul %32, %31, %cst_15 {dimension_numbers = #tpu.dot_dimension_numbers<[1], [0], [0], [1], [0, 0, 1, 1], [], []>} : vector<32x32xf32>, vector<32x128xf32>, vector<32x128xf32> -> vector<32x128xf32>
    %c160 = arith.constant 160 : index
    %c0_16 = arith.constant 0 : index
    %34 = vector.load %arg4[%c160, %c0_16] : memref<296x1xf32, #tpu.memory_space<vmem>>, vector<32x1xf32>
    %35 = vector.broadcast %34 : vector<32x1xf32> to vector<32x128xf32>
    %36 = arith.addf %33, %35 : vector<32x128xf32>
    %37 = arith.addf %11, %36 : vector<32x128xf32>
    %38 = arith.mulf %37, %6 : vector<32x128xf32>
    %c128 = arith.constant 128 : index
    %c0_17 = arith.constant 0 : index
    %39 = vector.load %arg3[%c128, %c0_17] : memref<552x32xf32, #tpu.memory_space<vmem>>, vector<96x32xf32>
    %cst_18 = arith.constant dense<0.000000e+00> : vector<96x128xf32>
    %40 = tpu.matmul %39, %38, %cst_18 {dimension_numbers = #tpu.dot_dimension_numbers<[1], [0], [0], [1], [0, 0, 1, 1], [], []>} : vector<96x32xf32>, vector<32x128xf32>, vector<96x128xf32> -> vector<96x128xf32>
    %41 = vector.extract_strided_slice %40 {offsets = [0, 0], sizes = [32, 128], strides = [1, 1]} : vector<96x128xf32> to vector<32x128xf32>
    %42 = vector.extract_strided_slice %40 {offsets = [32, 0], sizes = [32, 128], strides = [1, 1]} : vector<96x128xf32> to vector<32x128xf32>
    %43 = vector.extract_strided_slice %40 {offsets = [64, 0], sizes = [32, 128], strides = [1, 1]} : vector<96x128xf32> to vector<32x128xf32>
    %c2_i32 = arith.constant 2 : i32
    %44 = tpu.dynamic_rotate %41 by %c2_i32 dim 1 : vector<32x128xf32>, i32 -> vector<32x128xf32>
    %45 = vector.extract_strided_slice %3 {offsets = [3, 0], sizes = [1, 128], strides = [1, 1]} : vector<9x128xf32> to vector<1x128xf32>
    %46 = vector.broadcast %45 : vector<1x128xf32> to vector<32x128xf32>
    %47 = arith.mulf %44, %46 : vector<32x128xf32>
    %c126_i32 = arith.constant 126 : i32
    %48 = tpu.dynamic_rotate %43 by %c126_i32 dim 1 : vector<32x128xf32>, i32 -> vector<32x128xf32>
    %49 = vector.extract_strided_slice %3 {offsets = [4, 0], sizes = [1, 128], strides = [1, 1]} : vector<9x128xf32> to vector<1x128xf32>
    %50 = vector.broadcast %49 : vector<1x128xf32> to vector<32x128xf32>
    %51 = arith.mulf %48, %50 : vector<32x128xf32>
    %52 = arith.addf %47, %42 : vector<32x128xf32>
    %53 = arith.addf %52, %51 : vector<32x128xf32>
    %c64 = arith.constant 64 : index
    %c0_19 = arith.constant 0 : index
    %54 = vector.load %arg4[%c64, %c0_19] : memref<296x1xf32, #tpu.memory_space<vmem>>, vector<32x1xf32>
    %55 = vector.broadcast %54 : vector<32x1xf32> to vector<32x128xf32>
    %56 = arith.addf %53, %55 : vector<32x128xf32>
    %cst_20 = arith.constant 0.000000e+00 : f32
    %57 = vector.broadcast %cst_20 : f32 to vector<32x128xf32>
    %58 = arith.maximumf %56, %57 : vector<32x128xf32>
    %c448 = arith.constant 448 : index
    %c0_21 = arith.constant 0 : index
    %59 = vector.load %arg3[%c448, %c0_21] : memref<552x32xf32, #tpu.memory_space<vmem>>, vector<32x32xf32>
    %cst_22 = arith.constant dense<0.000000e+00> : vector<32x128xf32>
    %60 = tpu.matmul %59, %58, %cst_22 {dimension_numbers = #tpu.dot_dimension_numbers<[1], [0], [0], [1], [0, 0, 1, 1], [], []>} : vector<32x32xf32>, vector<32x128xf32>, vector<32x128xf32> -> vector<32x128xf32>
    %c192 = arith.constant 192 : index
    %c0_23 = arith.constant 0 : index
    %61 = vector.load %arg4[%c192, %c0_23] : memref<296x1xf32, #tpu.memory_space<vmem>>, vector<32x1xf32>
    %62 = vector.broadcast %61 : vector<32x1xf32> to vector<32x128xf32>
    %63 = arith.addf %60, %62 : vector<32x128xf32>
    %64 = arith.addf %38, %63 : vector<32x128xf32>
    %65 = arith.mulf %64, %6 : vector<32x128xf32>
    %c224 = arith.constant 224 : index
    %c0_24 = arith.constant 0 : index
    %66 = vector.load %arg3[%c224, %c0_24] : memref<552x32xf32, #tpu.memory_space<vmem>>, vector<96x32xf32>
    %cst_25 = arith.constant dense<0.000000e+00> : vector<96x128xf32>
    %67 = tpu.matmul %66, %65, %cst_25 {dimension_numbers = #tpu.dot_dimension_numbers<[1], [0], [0], [1], [0, 0, 1, 1], [], []>} : vector<96x32xf32>, vector<32x128xf32>, vector<96x128xf32> -> vector<96x128xf32>
    %68 = vector.extract_strided_slice %67 {offsets = [0, 0], sizes = [32, 128], strides = [1, 1]} : vector<96x128xf32> to vector<32x128xf32>
    %69 = vector.extract_strided_slice %67 {offsets = [32, 0], sizes = [32, 128], strides = [1, 1]} : vector<96x128xf32> to vector<32x128xf32>
    %70 = vector.extract_strided_slice %67 {offsets = [64, 0], sizes = [32, 128], strides = [1, 1]} : vector<96x128xf32> to vector<32x128xf32>
    %c4_i32 = arith.constant 4 : i32
    %71 = tpu.dynamic_rotate %68 by %c4_i32 dim 1 : vector<32x128xf32>, i32 -> vector<32x128xf32>
    %72 = vector.extract_strided_slice %3 {offsets = [5, 0], sizes = [1, 128], strides = [1, 1]} : vector<9x128xf32> to vector<1x128xf32>
    %73 = vector.broadcast %72 : vector<1x128xf32> to vector<32x128xf32>
    %74 = arith.mulf %71, %73 : vector<32x128xf32>
    %c124_i32 = arith.constant 124 : i32
    %75 = tpu.dynamic_rotate %70 by %c124_i32 dim 1 : vector<32x128xf32>, i32 -> vector<32x128xf32>
    %76 = vector.extract_strided_slice %3 {offsets = [6, 0], sizes = [1, 128], strides = [1, 1]} : vector<9x128xf32> to vector<1x128xf32>
    %77 = vector.broadcast %76 : vector<1x128xf32> to vector<32x128xf32>
    %78 = arith.mulf %75, %77 : vector<32x128xf32>
    %79 = arith.addf %74, %69 : vector<32x128xf32>
    %80 = arith.addf %79, %78 : vector<32x128xf32>
    %c96 = arith.constant 96 : index
    %c0_26 = arith.constant 0 : index
    %81 = vector.load %arg4[%c96, %c0_26] : memref<296x1xf32, #tpu.memory_space<vmem>>, vector<32x1xf32>
    %82 = vector.broadcast %81 : vector<32x1xf32> to vector<32x128xf32>
    %83 = arith.addf %80, %82 : vector<32x128xf32>
    %cst_27 = arith.constant 0.000000e+00 : f32
    %84 = vector.broadcast %cst_27 : f32 to vector<32x128xf32>
    %85 = arith.maximumf %83, %84 : vector<32x128xf32>
    %c480 = arith.constant 480 : index
    %c0_28 = arith.constant 0 : index
    %86 = vector.load %arg3[%c480, %c0_28] : memref<552x32xf32, #tpu.memory_space<vmem>>, vector<32x32xf32>
    %cst_29 = arith.constant dense<0.000000e+00> : vector<32x128xf32>
    %87 = tpu.matmul %86, %85, %cst_29 {dimension_numbers = #tpu.dot_dimension_numbers<[1], [0], [0], [1], [0, 0, 1, 1], [], []>} : vector<32x32xf32>, vector<32x128xf32>, vector<32x128xf32> -> vector<32x128xf32>
    %c224_30 = arith.constant 224 : index
    %c0_31 = arith.constant 0 : index
    %88 = vector.load %arg4[%c224_30, %c0_31] : memref<296x1xf32, #tpu.memory_space<vmem>>, vector<32x1xf32>
    %89 = vector.broadcast %88 : vector<32x1xf32> to vector<32x128xf32>
    %90 = arith.addf %87, %89 : vector<32x128xf32>
    %91 = arith.addf %65, %90 : vector<32x128xf32>
    %92 = arith.mulf %91, %6 : vector<32x128xf32>
    %c320 = arith.constant 320 : index
    %c0_32 = arith.constant 0 : index
    %93 = vector.load %arg3[%c320, %c0_32] : memref<552x32xf32, #tpu.memory_space<vmem>>, vector<96x32xf32>
    %cst_33 = arith.constant dense<0.000000e+00> : vector<96x128xf32>
    %94 = tpu.matmul %93, %92, %cst_33 {dimension_numbers = #tpu.dot_dimension_numbers<[1], [0], [0], [1], [0, 0, 1, 1], [], []>} : vector<96x32xf32>, vector<32x128xf32>, vector<96x128xf32> -> vector<96x128xf32>
    %95 = vector.extract_strided_slice %94 {offsets = [0, 0], sizes = [32, 128], strides = [1, 1]} : vector<96x128xf32> to vector<32x128xf32>
    %96 = vector.extract_strided_slice %94 {offsets = [32, 0], sizes = [32, 128], strides = [1, 1]} : vector<96x128xf32> to vector<32x128xf32>
    %97 = vector.extract_strided_slice %94 {offsets = [64, 0], sizes = [32, 128], strides = [1, 1]} : vector<96x128xf32> to vector<32x128xf32>
    %c8_i32 = arith.constant 8 : i32
    %98 = tpu.dynamic_rotate %95 by %c8_i32 dim 1 : vector<32x128xf32>, i32 -> vector<32x128xf32>
    %99 = vector.extract_strided_slice %3 {offsets = [7, 0], sizes = [1, 128], strides = [1, 1]} : vector<9x128xf32> to vector<1x128xf32>
    %100 = vector.broadcast %99 : vector<1x128xf32> to vector<32x128xf32>
    %101 = arith.mulf %98, %100 : vector<32x128xf32>
    %c120_i32 = arith.constant 120 : i32
    %102 = tpu.dynamic_rotate %97 by %c120_i32 dim 1 : vector<32x128xf32>, i32 -> vector<32x128xf32>
    %103 = vector.extract_strided_slice %3 {offsets = [8, 0], sizes = [1, 128], strides = [1, 1]} : vector<9x128xf32> to vector<1x128xf32>
    %104 = vector.broadcast %103 : vector<1x128xf32> to vector<32x128xf32>
    %105 = arith.mulf %102, %104 : vector<32x128xf32>
    %106 = arith.addf %101, %96 : vector<32x128xf32>
    %107 = arith.addf %106, %105 : vector<32x128xf32>
    %c128_34 = arith.constant 128 : index
    %c0_35 = arith.constant 0 : index
    %108 = vector.load %arg4[%c128_34, %c0_35] : memref<296x1xf32, #tpu.memory_space<vmem>>, vector<32x1xf32>
    %109 = vector.broadcast %108 : vector<32x1xf32> to vector<32x128xf32>
    %110 = arith.addf %107, %109 : vector<32x128xf32>
    %cst_36 = arith.constant 0.000000e+00 : f32
    %111 = vector.broadcast %cst_36 : f32 to vector<32x128xf32>
    %112 = arith.maximumf %110, %111 : vector<32x128xf32>
    %c512 = arith.constant 512 : index
    %c0_37 = arith.constant 0 : index
    %113 = vector.load %arg3[%c512, %c0_37] : memref<552x32xf32, #tpu.memory_space<vmem>>, vector<32x32xf32>
    %cst_38 = arith.constant dense<0.000000e+00> : vector<32x128xf32>
    %114 = tpu.matmul %113, %112, %cst_38 {dimension_numbers = #tpu.dot_dimension_numbers<[1], [0], [0], [1], [0, 0, 1, 1], [], []>} : vector<32x32xf32>, vector<32x128xf32>, vector<32x128xf32> -> vector<32x128xf32>
    %c256 = arith.constant 256 : index
    %c0_39 = arith.constant 0 : index
    %115 = vector.load %arg4[%c256, %c0_39] : memref<296x1xf32, #tpu.memory_space<vmem>>, vector<32x1xf32>
    %116 = vector.broadcast %115 : vector<32x1xf32> to vector<32x128xf32>
    %117 = arith.addf %114, %116 : vector<32x128xf32>
    %118 = arith.addf %92, %117 : vector<32x128xf32>
    %119 = arith.mulf %118, %6 : vector<32x128xf32>
    %c544 = arith.constant 544 : index
    %c0_40 = arith.constant 0 : index
    %120 = vector.load %arg3[%c544, %c0_40] : memref<552x32xf32, #tpu.memory_space<vmem>>, vector<8x32xf32>
    %cst_41 = arith.constant dense<0.000000e+00> : vector<8x128xf32>
    %121 = tpu.matmul %120, %119, %cst_41 {dimension_numbers = #tpu.dot_dimension_numbers<[1], [0], [0], [1], [0, 0, 1, 1], [], []>} : vector<8x32xf32>, vector<32x128xf32>, vector<8x128xf32> -> vector<8x128xf32>
    %c288 = arith.constant 288 : index
    %c0_42 = arith.constant 0 : index
    %122 = vector.load %arg4[%c288, %c0_42] : memref<296x1xf32, #tpu.memory_space<vmem>>, vector<8x1xf32>
    %123 = vector.broadcast %122 : vector<8x1xf32> to vector<8x128xf32>
    %124 = arith.addf %121, %123 : vector<8x128xf32>
    %125 = vector.broadcast %4 : vector<1x128xf32> to vector<8x128xf32>
    %126 = arith.mulf %124, %125 : vector<8x128xf32>
    %c0_43 = arith.constant 0 : index
    %c0_44 = arith.constant 0 : index
    %c0_45 = arith.constant 0 : index
    %127 = vector.load %arg5[%c0_43, %c0_44, %c0_45] : memref<1x8x128xf32, #tpu.memory_space<vmem>>, vector<1x8x128xf32>
    %128 = vector.shape_cast %127 : vector<1x8x128xf32> to vector<8x128xf32>
    %129 = vector.shape_cast %126 : vector<8x128xf32> to vector<1x8x128xf32>
    tpu.vector_store %arg5[%c0_43, %c0_44, %c0_45], %129 {strides = array<i32>} : memref<1x8x128xf32, #tpu.memory_space<vmem>>, vector<1x8x128xf32>,
    %c0_46 = arith.constant 0 : index
    %c0_47 = arith.constant 0 : index
    %c0_48 = arith.constant 0 : index
    %130 = vector.load %arg6[%c0_46, %c0_47, %c0_48] : memref<1x32x128xf32, #tpu.memory_space<vmem>>, vector<1x32x128xf32>
    %131 = vector.shape_cast %130 : vector<1x32x128xf32> to vector<32x128xf32>
    %132 = vector.shape_cast %119 : vector<32x128xf32> to vector<1x32x128xf32>
    tpu.vector_store %arg6[%c0_46, %c0_47, %c0_48], %132 {strides = array<i32>} : memref<1x32x128xf32, #tpu.memory_space<vmem>>, vector<1x32x128xf32>,
    return
  }
  func.func @transform_0(%arg0: i32) -> (i32, i32, i32) {
    %c0_i32 = arith.constant 0 : i32
    %c0_i32_0 = arith.constant 0 : i32
    %c0_i32_1 = arith.constant 0 : i32
    return %arg0, %c0_i32, %c0_i32_0 : i32, i32, i32
  }
  func.func @transform_1(%arg0: i32) -> (i32, i32, i32) {
    %c0_i32 = arith.constant 0 : i32
    %c0_i32_0 = arith.constant 0 : i32
    %c0_i32_1 = arith.constant 0 : i32
    return %arg0, %c0_i32, %c0_i32_0 : i32, i32, i32
  }
  func.func @transform_2(%arg0: i32) -> (i32, i32) {
    %c0_i32 = arith.constant 0 : i32
    %c0_i32_0 = arith.constant 0 : i32
    %c0_i32_1 = arith.constant 0 : i32
    return %c0_i32, %c0_i32_0 : i32, i32
  }
  func.func @transform_3(%arg0: i32) -> (i32, i32) {
    %c0_i32 = arith.constant 0 : i32
    %c0_i32_0 = arith.constant 0 : i32
    %c0_i32_1 = arith.constant 0 : i32
    return %c0_i32, %c0_i32_0 : i32, i32
  }
  func.func @transform_4(%arg0: i32) -> (i32, i32, i32) {
    %c0_i32 = arith.constant 0 : i32
    %c0_i32_0 = arith.constant 0 : i32
    %c0_i32_1 = arith.constant 0 : i32
    return %arg0, %c0_i32, %c0_i32_0 : i32, i32, i32
  }
  func.func @transform_5(%arg0: i32) -> (i32, i32, i32) {
    %c0_i32 = arith.constant 0 : i32
    %c0_i32_0 = arith.constant 0 : i32
    %c0_i32_1 = arith.constant 0 : i32
    return %arg0, %c0_i32, %c0_i32_0 : i32, i32, i32
  }
}

</mosaic_0001>

<bundles_post_ra>
// kernel: tpu_custom_call.1
= control target key start
LH: loop header
LB: loop body
LE: loop exit
PB: predicated region body
PF: predicated region fallthrough
CT: control target
= control target key end

     0   :  { %11 = vsyncpa [#allocation3], 0  ;;  %s3357_s0 = inlined_call_operand.vmem [shape: f32[2,16,128], index: 0, kind: input, shape index: {}]   ;;  %s3358_s1 = inlined_call_operand.vmem [shape: f32[2,9,128], index: 1, kind: input, shape index: {}]   ;;  %s3359_s2 = inlined_call_operand.vmem [shape: f32[552,32], index: 2, kind: input, shape index: {}]   ;;  %s3360_s3 = inlined_call_operand.vmem [shape: f32[296,1], index: 3, kind: input, shape index: {}]   ;;  %s3361_s4 = inlined_call_operand.hbm [shape: f32[2,8,128], index: 4, kind: output, shape index: {0}]   ;;  %s3362_s5 = inlined_call_operand.hbm [shape: f32[2,32,128], index: 5, kind: output, shape index: {1}]  }
   0x1   :  { %13 = vsyncpa [#allocation3 + $0x1], 0 }
   0x2   :  { %14 = vsyncpa [#allocation5], 0 }
   0x3   :  { %16 = vsyncpa [#allocation5 + $0x1], 0  ;;  %s2697_s18 = smov 0   ;;  %s2699_s19 = smov 0  }
   0x4   :  { %s2701_s20 = smov 0   ;;  %s2703_s21 = smov 0  }
   0x5 LB: > { %s2718_s22 = sadd.s32 4294967295, %s2651_s21   ;;  %s2125_s23 = sadd.s32 4294967294, %s2651_s21   ;;  %s2651_s21 = sphi %s2703_s21, %s3368_s21   ;;  %s2647_s20 = sphi %s2701_s20, %s3367_s20   ;;  %s2643_s19 = sphi %s2699_s19, %s3366_s19   ;;  %s2639_s18 = sphi %s2697_s18, %s3365_s18  }
   0x6   : > { %s2722_s24 = sadd.s32 1, %s2651_s21   ;;  %s123_s25 = sadd.s32 1, %s2647_s20 }
   0x7   : > { %s120_s26 = ssub.s32 %s2651_s21, %s2722_s24  ;;  %p133_p0 = scmp.ne.s32.totalorder %s2647_s20, %s2643_s19 }
   0x8   : > { %p121_p1 = scmp.eq.s32.totalorder %s120_s26, 0  ;;  %p134_p2 = scmp.eq.s32.totalorder %s2718_s22, 1 }
   0x9   : > { %p139_p3 = scmp.ne.s32.totalorder %s2643_s19, %s2639_s18  ;;  %p140_p4 = scmp.eq.s32.totalorder %s2125_s23, 1 }
   0xa   : > { %s2733_s27 = scalar_select %p121_p1, %s2647_s20, %s123_s25  }
   0xb   : > { %p2735_p5 = por %p134_p2, %p133_p0  ;;  %p2739_p6 = por %p140_p4, %p139_p3 }
   0xc   : > { %p2128_p7 = scmp.ge.s32.totalorder %s2651_s21, 1  ;;  %p206_p8 = scmp.lt.s32.totalorder %s2651_s21, 3 }
   0xe   : > { %p207_p9 = pnand %p2128_p7, %p206_p8 }
   0xf   : > { %p244_p10 = scmp.lt.s32.totalorder (!%p207_p9), %s2718_s22, 1  ;;  %s2654_s13 = smov (!%p207_p9), 1  }
  0x10   : > { %210 = sbr.rel (%p207_p9) target bundleno = 2686 (0xa7e), region = 36  ;;  %s2655_s15 = smov (!%p207_p9), 127  }
  0x11   : > { %s2658_s10 = smov (!%p207_p9), 4   ;;  %s2659_s12 = smov (!%p207_p9), 124  }
  0x12   : > { %s2660_s17 = smov (!%p207_p9), 8   ;;  %s2661_s23 = smov (!%p207_p9), 120  }
  0x13   : > { %s3274_s7 = sand.u32 (!%p207_p9), 1, %s2643_s19   ;;  %s2214_s16 = sshll.u32 (!%p207_p9), %s2718_s22, 9 }
  0x14   : > { %s2130_s8 = sshll.u32 (!%p207_p9), %s3274_s7, 5  ;;  %s2664_s30 = smov (!%p207_p9), [#allocation4]  }
  0x15   : > { %v262_v0 = vld [vmem:[%s3359_s2] sm:$0xff]  ;;  %vm290_vm0 = vcmask 130048   ;;  %v2653_v1 = vmov 0   ;;  %v269_v2 = vld [vmem:[%s3360_s3 + $0x18] sm:$0xff]  ;;  %v267_v3 = vld [vmem:[%s3360_s3 + $0x8] sm:$0xff]  ;;  %s2757_s11 = scalar_select %p244_p10, %s2718_s22, 1  ;;  %v258_v60 = vlaneseq }
  0x16   : > { %2326 = vmatprep.mubr.msk.f32.mxu0 %vm290_vm0, %v262_v0  ;;  %2560 = vset.pattern.permute.xlu1 %v2653_v1  ;;  %v266_v4 = vld [vmem:[%s3360_s3] sm:$0xff]  ;;  %v268_v5 = vld [vmem:[%s3360_s3 + $0x10] sm:$0xff]  ;;  %v605_v8 = vld [vmem:[%s3360_s3 + $0x38] sm:$0xff]  ;;  %vm400_vm1 = vcmask 261120   ;;  %vm2663_vm2 = vmmov 0   ;;  %s243_s9 = scalar_lea.vmem [#allocation4], %s2130_s8 }
  0x17   : > { %2559 = vset.pattern.permute.xlu0 %v2653_v1  ;;  %277 = vperm.xlu1 %2560, %v267_v3   ;;  %s2212_s14 = sshll.u32 %s2757_s11, 4  ;;  %v263_v9 = vld [vmem:[%s3359_s2 + $0x8] sm:$0xff]  ;;  %v604_v10 = vld [vmem:[%s3360_s3 + $0x30] sm:$0xff]  ;;  %v265_v13 = vld [vmem:[%s3359_s2 + $0x18] sm:$0xff]  ;;  %v2886_v63 = vshrl.u32 %v258_v60, 7  ;;  %s2656_s11 = smov 2  }
  0x18   : > { %287 = vperm.xlu0 %2559, %v269_v2   ;;  %s248_s25 = scalar_lea.vmem %s3357_s0, %s2212_s14  ;;  %v264_v11 = vld [vmem:[%s3359_s2 + $0x10] sm:$0xff]  ;;  %v603_v12 = vld [vmem:[%s3360_s3 + $0x28] sm:$0xff]  ;;  %v388_v14 = vld [vmem:[%s3359_s2 + $0x20] sm:$0xff]  ;;  %s2893_s6 = scalar_lea.vmem %s3358_s1, %s2212_s14 }
  0x19   : > { %v255_v6 = vld [vmem:[%s248_s25 + $0x8] sm:$0xff]  ;;  %v254_v7 = vld [vmem:[%s248_s25] sm:$0xff]  ;;  %2340 = vmatprep.mubr.msk.f32.mxu1 %vm400_vm1, %v388_v14  ;;  %v390_v28 = vld [vmem:[%s3359_s2 + $0x30] sm:$0xff]  ;;  %v572_v1 = vsub.s32 1, %v2886_v63  ;;  %s2657_s14 = smov 126  }
  0x1a   : > { %2322 = vmatprep.subr.mxu0 %v255_v6  ;;  %v389_v27 = vld [vmem:[%s3359_s2 + $0x28] sm:$0xff]  ;;  %v391_v29 = vld [vmem:[%s3359_s2 + $0x38] sm:$0xff]  ;;  %v392_v30 = vld [vmem:[%s3359_s2 + $0x40] sm:$0xff] }
  0x1b   : > { %272 = vperm.xlu1 %2560, %v266_v4   ;;  %2323 = vmatpush3.msra.mxu0 %v255_v6  ;;  %v393_v31 = vld [vmem:[%s3359_s2 + $0x48] sm:$0xff]  ;;  %v394_v32 = vld [vmem:[%s3359_s2 + $0x50] sm:$0xff]  ;;  %v395_v33 = vld [vmem:[%s3359_s2 + $0x58] sm:$0xff]  ;;  %v588_v4 = vsub.s32 2, %v2886_v63 }
  0x1c   : > { %282 = vperm.xlu0 %2559, %v268_v5   ;;  %2324 = vmatprep.subr.mxu0 %v254_v7  ;;  %v396_v34 = vld [vmem:[%s3359_s2 + $0x60] sm:$0xff]  ;;  %v397_v35 = vld [vmem:[%s3359_s2 + $0x68] sm:$0xff]  ;;  %v398_v36 = vld [vmem:[%s3359_s2 + $0x70] sm:$0xff] }
  0x1d   : > { %2325 = vmatpush3.msra.mxu0 %v254_v7  ;;  %v399_v37 = vld [vmem:[%s3359_s2 + $0x78] sm:$0xff]  ;;  %v602_v50 = vld [vmem:[%s3360_s3 + $0x20] sm:$0xff]  ;;  %v640_v53 = vld [vmem:[%s3360_s3 + $0xb0] sm:$0xff] }
  0x1e   : > { %2327 = vmatmul.mubr.msk.f32.vlgmr.msra.gmra.mxu0 %vm290_vm0, %v263_v9  ;;  %v634_v51 = vld [vmem:[%s3359_s2 + $0x1a0] sm:$0xff]  ;;  %v641_v52 = vld [vmem:[%s3360_s3 + $0xb8] sm:$0xff]  ;;  %v639_v54 = vld [vmem:[%s3360_s3 + $0xa8] sm:$0xff] }
  0x1f   : > { %623 = vperm.xlu1 %2560, %v605_v8   ;;  %2329 = vmatprep.mubr.msk.f32.mxu0 %vm290_vm0, %v264_v11  ;;  %v638_v55 = vld [vmem:[%s3360_s3 + $0xa0] sm:$0xff]  ;;  %v982_v56 = vld [vmem:[%s3360_s3 + $0x50] sm:$0xff]  ;;  %v983_v57 = vld [vmem:[%s3360_s3 + $0x58] sm:$0xff] }
  0x20   : > { %618 = vperm.xlu0 %2559, %v604_v10   ;;  %v981_v58 = vld [vmem:[%s3360_s3 + $0x48] sm:$0xff]  ;;  %v2897_v2 = vld [vmem:[%s2893_s6] sm:$0xff] }
  0x21   : > { %v573_v5 = vrot.slane %v2897_v2, %v572_v1  ;;  %v589_v9 = vrot.slane %v2897_v2, %v588_v4  ;;  %v770_v4 = vld [vmem:[%s3359_s2 + $0x98] sm:$0xff] }
  0x22   : > { %2330 = vmatmul.mubr.msk.f32.gmra.mxu0 %vm290_vm0, %v265_v13 }
  0x23   : > { %613 = vperm.xlu1 %2560, %v603_v12   ;;  %2366 = vmatprep.mubr.msk.f32.mxu0 %vm400_vm1, %v634_v51 }
  0x92   : > { %v278_v18 = vpop.permute.xlu1 %277 }
  0x93   : > { %v288_v15 = vpop.permute.xlu0 %287 }
  0x96   : > { %v273_v25 = vpop.permute.xlu1 %272 }
  0x97   : > { %v283_v21 = vpop.permute.xlu0 %282 }
  0x9a   : > { %v624_v62 = vpop.permute.xlu1 %623 }
  0x9b   : > { %v619_v59 = vpop.permute.xlu0 %618 }
  0x9e   : > { %v614_v3 = vpop.permute.xlu1 %613 }
  0xde   : > { %v2328_v16 = vpop.f32.mrf.mxu0 }
  0xdf   : > { %v2802_v24 = vadd.f32 %v2328_v16, %v278_v18 }
  0xe0   : > { %v369_v17 = vpop.f32.mrf.mxu0 }
  0xe1   : > { %v2806_v26 = vadd.f32 %v369_v17, %v273_v25 }
  0xe2   : > { %v2331_v19 = vpop.f32.mrf.mxu0 }
  0xe3   : > { %v2796_v20 = vadd.f32 %v2331_v19, %v288_v15 }
  0xe4   : > { %v379_v22 = vpop.f32.mrf.mxu0 }
  0xe5   : > { %v2798_v23 = vadd.f32 %v379_v22, %v283_v21  ;;  %2332 = vmatprep.subr.mxu1 %v2796_v20 }
  0xe6   : > { %2333 = vmatpush3.msra.mxu1 %v2796_v20 }
  0xe7   : > { %2334 = vmatprep.subr.mxu1 %v2798_v23 }
  0xe8   : > { %2335 = vmatpush3.msra.mxu1 %v2798_v23 }
  0xe9   : > { %2336 = vmatprep.subr.mxu1 %v2802_v24 }
  0xea   : > { %2337 = vmatpush3.msra.mxu1 %v2802_v24 }
  0xeb   : > { %2338 = vmatprep.subr.mxu1 %v2806_v26 }
  0xec   : > { %2339 = vmatpush3.msra.mxu1 %v2806_v26 }
  0xed   : > { %2341 = vmatmul.mubr.msk.f32.vlgmr.msra.gmra.mxu1 %vm400_vm1, %v389_v27 }
  0xee   : > { %2343 = vmatprep.mubr.msk.f32.mxu1 %vm400_vm1, %v390_v28 }
  0xf1   : > { %2344 = vmatmul.mubr.msk.f32.gmra.mxu1 %vm400_vm1, %v391_v29 }
  0xf2   : > { %2346 = vmatprep.mubr.msk.f32.mxu1 %vm400_vm1, %v392_v30 }
  0xf5   : > { %2347 = vmatmul.mubr.msk.f32.gmra.mxu1 %vm400_vm1, %v393_v31 }
  0xf6   : > { %2349 = vmatprep.mubr.msk.f32.mxu1 %vm400_vm1, %v394_v32 }
  0xf9   : > { %2350 = vmatmul.mubr.msk.f32.gmra.mxu1 %vm400_vm1, %v395_v33 }
  0xfa   : > { %2352 = vmatprep.mubr.msk.f32.mxu1 %vm400_vm1, %v396_v34 }
  0xfd   : > { %2353 = vmatmul.mubr.msk.f32.gmra.mxu1 %vm400_vm1, %v397_v35 }
  0xfe   : > { %2355 = vmatprep.mubr.msk.f32.mxu1 %vm400_vm1, %v398_v36 }
 0x101   : > { %2356 = vmatmul.mubr.msk.f32.gmra.mxu1 %vm400_vm1, %v399_v37 }
 0x1ad   : > { %v2342_v38 = vpop.f32.mrf.mxu1 }
 0x1ae   : > { %564 = vrot.lane.b32.xlu1 %v2342_v38, %s2654_s13 }
 0x1af   : > { %v503_v39 = vpop.f32.mrf.mxu1 }
 0x1b0   : > { %562 = vrot.lane.b32.xlu0 %v503_v39, %s2654_s13 }
 0x1b1   : > { %v2345_v40 = vpop.f32.mrf.mxu1 }
 0x1b3   : > { %v513_v41 = vpop.f32.mrf.mxu1 }
 0x1b4   : > { %568 = vrot.lane.b32.xlu0 %v2345_v40, %s2654_s13 }
 0x1b5   : > { %v2348_v42 = vpop.f32.mrf.mxu1 }
 0x1b7   : > { %v2856_v43 = vpop.f32.mrf.mxu1 }
 0x1b8   : > { %566 = vrot.lane.b32.xlu0 %v513_v41, %s2654_s13  ;;  %s2019_s13 = sshll.u32 %s243_s9, 4  ;;  %s3289_s13 = int_to_ptr.vmem [resolvable:$true] %s2019_s13 }
 0x1b9   : > { %v2351_v44 = vpop.f32.mrf.mxu1  ;;  %s2561_s26 = scalar_lea.vmem %s3289_s13, 512 }
 0x1ba   : > { %p2562_p11 = scmp.ne.s32.totalorder %s3289_s13, %s2561_s26 }
 0x1bb   : > { %v533_v45 = vpop.f32.mrf.mxu1 }
 0x1bc   : > { %p2563_p12 = pnand %p2562_p11, %p2735_p5 }
 0x1bd   : > { %v2354_v46 = vpop.f32.mrf.mxu1 }
 0x1be   : > { %p2564_p13 = pneg %p2563_p12 }
 0x1bf   : > { %v543_v47 = vpop.f32.mrf.mxu1 }
 0x1c1   : > { %v2357_v48 = vpop.f32.mrf.mxu1 }
 0x1c2   : > { %584 = vrot.lane.b32.xlu1 %v2357_v48, %s2655_s15 }
 0x1c3   : > { %v553_v49 = vpop.f32.mrf.mxu1 }
 0x1c4   : > { %582 = vrot.lane.b32.xlu0 %v553_v49, %s2655_s15 }
 0x1c6   : > { %580 = vrot.lane.b32.xlu1 %v2354_v46, %s2655_s15 }
 0x1c8   : > { %608 = vperm.xlu0 %2559, %v602_v50   ;;  %v260_v50 = vsub.s32 0, %v2886_v63 }
 0x1ca   : > { %578 = vrot.lane.b32.xlu1 %v543_v47, %s2655_s15 }
 0x1cc   : > { %659 = vperm.xlu0 %2559, %v641_v52  }
 0x1ce   : > { %654 = vperm.xlu1 %2560, %v640_v53  }
 0x1d0   : > { %649 = vperm.xlu0 %2559, %v639_v54  }
 0x1d2   : > { %644 = vperm.xlu1 %2560, %v638_v55  }
 0x1d4   : > { %996 = vperm.xlu0 %2559, %v982_v56  }
 0x1d6   : > { %1001 = vperm.xlu1 %2560, %v983_v57   ;;  %v2921_v57 = vrot.slane %v2897_v2, %v260_v50 }
 0x1da   : > { %991 = vperm.xlu1 %2560, %v981_v58  }
 0x220   : > { %v565_v6 = vpop.permute.xlu1 %564 }
 0x221   : > { %v575_v12 = vmul.f32 %v573_v5, %v565_v6  ;;  %v772_v6 = vld [vmem:[%s3359_s2 + $0xa8] sm:$0xff] }
 0x222   : > { %v563_v61 = vpop.permute.xlu0 %562 }
 0x223   : > { %v595_v21 = vadd.f32 %v2348_v42, %v575_v12  ;;  %v574_v31 = vmul.f32 %v573_v5, %v563_v61  ;;  %v635_v42 = vld [vmem:[%s3359_s2 + $0x1a8] sm:$0xff]  ;;  %v778_v12 = vld [vmem:[%s3359_s2 + $0xd8] sm:$0xff] }
 0x225   : > { %v594_v37 = vadd.f32 %v574_v31, %v2856_v43  ;;  %v637_v43 = vld [vmem:[%s3359_s2 + $0x1b8] sm:$0xff] }
 0x226   : > { %v569_v0 = vpop.permute.xlu0 %568  ;;  %v1019_v31 = vld [vmem:[%s3360_s3 + $0xd8] sm:$0xff] }
 0x227   : > { %v577_v8 = vmul.f32 %v573_v5, %v569_v0 }
 0x229   : > { %v597_v13 = vadd.f32 %v2351_v44, %v577_v8  ;;  %v636_v44 = vld [vmem:[%s3359_s2 + $0x1b0] sm:$0xff]  ;;  %v774_v8 = vld [vmem:[%s3359_s2 + $0xb8] sm:$0xff] }
 0x22a   : > { %v567_v7 = vpop.permute.xlu0 %566 }
 0x22b   : > { %v576_v10 = vmul.f32 %v573_v5, %v567_v7  ;;  %v771_v5 = vld [vmem:[%s3359_s2 + $0xa0] sm:$0xff]  ;;  %v773_v7 = vld [vmem:[%s3359_s2 + $0xb0] sm:$0xff] }
 0x22d   : > { %v596_v16 = vadd.f32 %v576_v10, %v533_v45  ;;  %v767_v45 = vld [vmem:[%s3359_s2 + $0x80] sm:$0xff]  ;;  %v776_v10 = vld [vmem:[%s3359_s2 + $0xc8] sm:$0xff] }
 0x234   : > { %v585_v11 = vpop.permute.xlu1 %584 }
 0x235   : > { %v593_v14 = vmul.f32 %v589_v9, %v585_v11  ;;  %v777_v11 = vld [vmem:[%s3359_s2 + $0xd0] sm:$0xff] }
 0x236   : > { %v583_v15 = vpop.permute.xlu0 %582 }
 0x237   : > { %v601_v17 = vadd.f32 %v597_v13, %v593_v14  ;;  %v592_v18 = vmul.f32 %v589_v9, %v583_v15 }
 0x238   : > { %v581_v19 = vpop.permute.xlu1 %580 }
 0x239   : > { %v600_v22 = vadd.f32 %v596_v16, %v592_v18  ;;  %v591_v25 = vmul.f32 %v589_v9, %v581_v19  ;;  %v629_v27 = vadd.f32 %v624_v62, %v601_v17 }
 0x23b   : > { %v599_v28 = vadd.f32 %v595_v21, %v591_v25  ;;  %v633_v29 = vmax.f32 %v629_v27, 0.0  ;;  %v628_v30 = vadd.f32 %v619_v59, %v600_v22 }
 0x23c   : > { %v579_v32 = vpop.permute.xlu1 %578 }
 0x23d   : > { %2358 = vmatprep.subr.mxu0 %v633_v29  ;;  %v632_v33 = vmax.f32 %v628_v30, 0.0  ;;  %v627_v34 = vadd.f32 %v614_v3, %v599_v28  ;;  %v590_v35 = vmul.f32 %v589_v9, %v579_v32  ;;  %v775_v9 = vld [vmem:[%s3359_s2 + $0xc0] sm:$0xff]  ;;  %v1018_v32 = vld [vmem:[%s3360_s3 + $0xd0] sm:$0xff] }
 0x23e   : > { %2359 = vmatpush3.msra.mxu0 %v633_v29  ;;  %v980_v29 = vld [vmem:[%s3360_s3 + $0x40] sm:$0xff] }
 0x23f   : > { %2360 = vmatprep.subr.mxu0 %v632_v33  ;;  %v631_v36 = vmax.f32 %v627_v34, 0.0  ;;  %v598_v38 = vadd.f32 %v594_v37, %v590_v35  ;;  %v1012_v30 = vld [vmem:[%s3359_s2 + $0x1c0] sm:$0xff]  ;;  %v1360_v35 = vld [vmem:[%s3360_s3 + $0x70] sm:$0xff]  ;;  %v1359_v37 = vld [vmem:[%s3360_s3 + $0x68] sm:$0xff] }
 0x240   : > { %2361 = vmatpush3.msra.mxu0 %v632_v33  ;;  %2406 = vmatprep.mubr.msk.f32.mxu1 %vm400_vm1, %v1012_v30  ;;  %v1017_v33 = vld [vmem:[%s3360_s3 + $0xc8] sm:$0xff]  ;;  %v1016_v34 = vld [vmem:[%s3360_s3 + $0xc0] sm:$0xff] }
 0x241   : > { %2362 = vmatprep.subr.mxu0 %v631_v36 }
 0x242   : > { %2363 = vmatpush3.msra.mxu0 %v631_v36  ;;  %v1361_v36 = vld [vmem:[%s3360_s3 + $0x78] sm:$0xff] }
 0x243   : > { %v609_v39 = vpop.permute.xlu0 %608 }
 0x244   : > { %v626_v40 = vadd.f32 %v609_v39, %v598_v38 }
 0x246   : > { %v630_v41 = vmax.f32 %v626_v40, 0.0 }
 0x247   : > { %v660_v46 = vpop.permute.xlu0 %659 }
 0x248   : > { %2364 = vmatprep.subr.mxu0 %v630_v41 }
 0x249   : > { %2365 = vmatpush3.msra.mxu0 %v630_v41  ;;  %v655_v47 = vpop.permute.xlu1 %654 }
 0x24a   : > { %2367 = vmatmul.mubr.msk.f32.vlgmr.msra.gmra.mxu0 %vm400_vm1, %v635_v42  ;;  %v950_v42 = vsub.s32 3, %v2886_v63 }
 0x24b   : > { %2369 = vmatprep.mubr.msk.f32.mxu0 %vm400_vm1, %v636_v44  ;;  %v650_v51 = vpop.permute.xlu0 %649 }
 0x24d   : > { %v645_v55 = vpop.permute.xlu1 %644 }
 0x24e   : > { %2370 = vmatmul.mubr.msk.f32.gmra.mxu0 %vm400_vm1, %v637_v43  ;;  %v966_v43 = vsub.s32 4, %v2886_v63 }
 0x24f   : > { %2380 = vmatprep.mubr.msk.f32.mxu0 %vm400_vm1, %v767_v45  ;;  %v997_v38 = vpop.permute.xlu0 %996  ;;  %v951_v45 = vrot.slane %v2897_v2, %v950_v42 }
 0x251   : > { %v1002_v40 = vpop.permute.xlu1 %1001 }
 0x255   : > { %v992_v44 = vpop.permute.xlu1 %991 }
 0x30a   : > { %v2368_v48 = vpop.f32.mrf.mxu0 }
 0x30b   : > { %v746_v53 = vadd.f32 %v2368_v48, %v650_v51 }
 0x30c   : > { %v740_v49 = vpop.f32.mrf.mxu0 }
 0x30d   : > { %v741_v58 = vadd.f32 %v740_v49, %v645_v55  ;;  %v760_v61 = vadd.f32 %v746_v53, %v2802_v24  ;;  %v768_v24 = vld [vmem:[%s3359_s2 + $0x88] sm:$0xff]  ;;  %v967_v49 = vrot.slane %v2897_v2, %v966_v43  ;;  %v1149_v43 = vld [vmem:[%s3359_s2 + $0x100] sm:$0xff] }
 0x30e   : > { %v2371_v52 = vpop.f32.mrf.mxu0 }
 0x30f   : > { %v756_v54 = vadd.f32 %v2371_v52, %v660_v46  ;;  %v759_v1 = vadd.f32 %v741_v58, %v2806_v26  ;;  %v769_v26 = vld [vmem:[%s3359_s2 + $0x90] sm:$0xff] }
 0x310   : > { %v750_v56 = vpop.f32.mrf.mxu0 }
 0x311   : > { %v762_v59 = vadd.f32 %v756_v54, %v2796_v20  ;;  %v751_v60 = vadd.f32 %v750_v56, %v655_v47  ;;  %v2937_v20 = vmul.f32 %v760_v61, %v2921_v57 }
 0x313   : > { %v761_v62 = vadd.f32 %v751_v60, %v2798_v23  ;;  %v2927_v0 = vmul.f32 %v762_v59, %v2921_v57  ;;  %v2942_v23 = vmul.f32 %v759_v1, %v2921_v57 }
 0x315   : > { %2372 = vmatprep.subr.mxu0 %v2927_v0  ;;  %v2932_v3 = vmul.f32 %v761_v62, %v2921_v57 }
 0x316   : > { %2373 = vmatpush3.msra.mxu0 %v2927_v0 }
 0x317   : > { %2374 = vmatprep.subr.mxu0 %v2932_v3 }
 0x318   : > { %2375 = vmatpush3.msra.mxu0 %v2932_v3 }
 0x319   : > { %2376 = vmatprep.subr.mxu0 %v2937_v20 }
 0x31a   : > { %2377 = vmatpush3.msra.mxu0 %v2937_v20 }
 0x31b   : > { %2378 = vmatprep.subr.mxu0 %v2942_v23 }
 0x31c   : > { %2379 = vmatpush3.msra.mxu0 %v2942_v23 }
 0x31d   : > { %2381 = vmatmul.mubr.msk.f32.vlgmr.msra.gmra.mxu0 %vm400_vm1, %v768_v24 }
 0x31e   : > { %2383 = vmatprep.mubr.msk.f32.mxu0 %vm400_vm1, %v769_v26 }
 0x321   : > { %2384 = vmatmul.mubr.msk.f32.gmra.mxu0 %vm400_vm1, %v770_v4 }
 0x322   : > { %2386 = vmatprep.mubr.msk.f32.mxu0 %vm400_vm1, %v771_v5 }
 0x325   : > { %2387 = vmatmul.mubr.msk.f32.gmra.mxu0 %vm400_vm1, %v772_v6 }
 0x326   : > { %2389 = vmatprep.mubr.msk.f32.mxu0 %vm400_vm1, %v773_v7 }
 0x329   : > { %2390 = vmatmul.mubr.msk.f32.gmra.mxu0 %vm400_vm1, %v774_v8 }
 0x32a   : > { %2392 = vmatprep.mubr.msk.f32.mxu0 %vm400_vm1, %v775_v9 }
 0x32d   : > { %2393 = vmatmul.mubr.msk.f32.gmra.mxu0 %vm400_vm1, %v776_v10 }
 0x32e   : > { %2395 = vmatprep.mubr.msk.f32.mxu0 %vm400_vm1, %v777_v11 }
 0x331   : > { %2396 = vmatmul.mubr.msk.f32.gmra.mxu0 %vm400_vm1, %v778_v12 }
 0x3dd   : > { %v2382_v13 = vpop.f32.mrf.mxu0 }
 0x3de   : > { %942 = vrot.lane.b32.xlu1 %v2382_v13, %s2656_s11 }
 0x3df   : > { %v881_v14 = vpop.f32.mrf.mxu0 }
 0x3e0   : > { %940 = vrot.lane.b32.xlu0 %v881_v14, %s2656_s11 }
 0x3e1   : > { %v2385_v15 = vpop.f32.mrf.mxu0 }
 0x3e3   : > { %v891_v16 = vpop.f32.mrf.mxu0 }
 0x3e4   : > { %946 = vrot.lane.b32.xlu0 %v2385_v15, %s2656_s11 }
 0x3e5   : > { %v2388_v17 = vpop.f32.mrf.mxu0 }
 0x3e7   : > { %v2991_v18 = vpop.f32.mrf.mxu0 }
 0x3e8   : > { %944 = vrot.lane.b32.xlu0 %v891_v16, %s2656_s11  ;;  %s2565_s11 = sshll.u32 %s2664_s30, 4  ;;  %s2566_s11 = int_to_ptr.vmem [resolvable:$false] %s2565_s11 }
 0x3e9   : > { %v2391_v19 = vpop.f32.mrf.mxu0  ;;  %p2568_p0 = scmp.lt.s32.totalorder %s3289_s13, %s2566_s11 }
 0x3eb   : > { %v911_v21 = vpop.f32.mrf.mxu0 }
 0x3ed   : > { %v2394_v22 = vpop.f32.mrf.mxu0 }
 0x3ef   : > { %v921_v25 = vpop.f32.mrf.mxu0 }
 0x3f1   : > { %v2397_v27 = vpop.f32.mrf.mxu0 }
 0x3f2   : > { %962 = vrot.lane.b32.xlu1 %v2397_v27, %s2657_s14 }
 0x3f3   : > { %v931_v28 = vpop.f32.mrf.mxu0 }
 0x3f4   : > { %960 = vrot.lane.b32.xlu0 %v931_v28, %s2657_s14 }
 0x3f6   : > { %958 = vrot.lane.b32.xlu1 %v2394_v22, %s2657_s14 }
 0x3f8   : > { %986 = vperm.xlu0 %2559, %v980_v29  }
 0x3fa   : > { %956 = vrot.lane.b32.xlu1 %v921_v25, %s2657_s14  ;;  %s2567_s14 = scalar_lea.vmem %s2566_s11, 1024 }
 0x3fb   : > { %p2569_p1 = scmp.lt.s32.totalorder %s2567_s14, %s2561_s26 }
 0x3fc   : > { %1037 = vperm.xlu0 %2559, %v1019_v31  }
 0x3fd   : > { %p2570_p2 = por %p2569_p1, %p2568_p0 }
 0x3fe   : > { %1032 = vperm.xlu1 %2560, %v1018_v32  }
 0x3ff   : > { %p2571_p3 = pnand %p2570_p2, %p2564_p13 }
 0x400   : > { %1027 = vperm.xlu0 %2559, %v1017_v33  }
 0x402   : > { %1022 = vperm.xlu1 %2560, %v1016_v34  }
 0x404   : > { %1374 = vperm.xlu0 %2559, %v1360_v35  }
 0x406   : > { %1379 = vperm.xlu1 %2560, %v1361_v36  }
 0x40a   : > { %1369 = vperm.xlu1 %2560, %v1359_v37  }
 0x450   : > { %v943_v46 = vpop.permute.xlu1 %942 }
 0x451   : > { %v953_v52 = vmul.f32 %v951_v45, %v943_v46  ;;  %v1151_v46 = vld [vmem:[%s3359_s2 + $0x110] sm:$0xff] }
 0x452   : > { %v941_v39 = vpop.permute.xlu0 %940 }
 0x453   : > { %v973_v61 = vadd.f32 %v2388_v17, %v953_v52  ;;  %v952_v6 = vmul.f32 %v951_v45, %v941_v39  ;;  %v1013_v17 = vld [vmem:[%s3359_s2 + $0x1c8] sm:$0xff] }
 0x455   : > { %v972_v12 = vadd.f32 %v952_v6, %v2991_v18  ;;  %v1015_v18 = vld [vmem:[%s3359_s2 + $0x1d8] sm:$0xff]  ;;  %v1396_v6 = vld [vmem:[%s3360_s3 + $0xf0] sm:$0xff] }
 0x456   : > { %v947_v41 = vpop.permute.xlu0 %946 }
 0x457   : > { %v955_v48 = vmul.f32 %v951_v45, %v947_v41 }
 0x459   : > { %v975_v53 = vadd.f32 %v2391_v19, %v955_v48  ;;  %v1014_v19 = vld [vmem:[%s3359_s2 + $0x1d0] sm:$0xff]  ;;  %v1153_v48 = vld [vmem:[%s3359_s2 + $0x120] sm:$0xff] }
 0x45a   : > { %v945_v47 = vpop.permute.xlu0 %944 }
 0x45b   : > { %v954_v50 = vmul.f32 %v951_v45, %v945_v47  ;;  %v1150_v45 = vld [vmem:[%s3359_s2 + $0x108] sm:$0xff]  ;;  %v1152_v47 = vld [vmem:[%s3359_s2 + $0x118] sm:$0xff] }
 0x45d   : > { %v974_v56 = vadd.f32 %v954_v50, %v911_v21  ;;  %v1145_v21 = vld [vmem:[%s3359_s2 + $0xe0] sm:$0xff]  ;;  %v1155_v50 = vld [vmem:[%s3359_s2 + $0x130] sm:$0xff] }
 0x464   : > { %v963_v51 = vpop.permute.xlu1 %962 }
 0x465   : > { %v971_v54 = vmul.f32 %v967_v49, %v963_v51  ;;  %v1156_v51 = vld [vmem:[%s3359_s2 + $0x138] sm:$0xff] }
 0x466   : > { %v961_v55 = vpop.permute.xlu0 %960 }
 0x467   : > { %v979_v58 = vadd.f32 %v975_v53, %v971_v54  ;;  %v970_v59 = vmul.f32 %v967_v49, %v961_v55 }
 0x468   : > { %v959_v60 = vpop.permute.xlu1 %958 }
 0x469   : > { %v978_v62 = vadd.f32 %v974_v56, %v970_v59  ;;  %v969_v1 = vmul.f32 %v967_v49, %v959_v60  ;;  %v1007_v24 = vadd.f32 %v1002_v40, %v979_v58 }
 0x46b   : > { %v977_v26 = vadd.f32 %v973_v61, %v969_v1  ;;  %v1011_v4 = vmax.f32 %v1007_v24, 0.0  ;;  %v1006_v5 = vadd.f32 %v997_v38, %v978_v62 }
 0x46c   : > { %v957_v7 = vpop.permute.xlu1 %956 }
 0x46d   : > { %2398 = vmatprep.subr.mxu1 %v1011_v4  ;;  %v1010_v8 = vmax.f32 %v1006_v5, 0.0  ;;  %v1005_v9 = vadd.f32 %v992_v44, %v977_v26  ;;  %v968_v10 = vmul.f32 %v967_v49, %v957_v7  ;;  %v1148_v44 = vld [vmem:[%s3359_s2 + $0xf8] sm:$0xff]  ;;  %v1154_v49 = vld [vmem:[%s3359_s2 + $0x128] sm:$0xff]  ;;  %v1358_v26 = vld [vmem:[%s3360_s3 + $0x60] sm:$0xff] }
 0x46e   : > { %2399 = vmatpush3.msra.mxu1 %v1011_v4  ;;  %v1390_v4 = vld [vmem:[%s3359_s2 + $0x1e0] sm:$0xff]  ;;  %v1397_v5 = vld [vmem:[%s3360_s3 + $0xf8] sm:$0xff]  ;;  %v1395_v7 = vld [vmem:[%s3360_s3 + $0xe8] sm:$0xff] }
 0x46f   : > { %2400 = vmatprep.subr.mxu1 %v1010_v8  ;;  %v1009_v11 = vmax.f32 %v1005_v9, 0.0  ;;  %v976_v13 = vadd.f32 %v972_v12, %v968_v10  ;;  %2446 = vmatprep.mubr.msk.f32.mxu0 %vm400_vm1, %v1390_v4  ;;  %v1738_v9 = vld [vmem:[%s3360_s3 + $0x90] sm:$0xff]  ;;  %v1739_v10 = vld [vmem:[%s3360_s3 + $0x98] sm:$0xff] }
 0x470   : > { %2401 = vmatpush3.msra.mxu1 %v1010_v8  ;;  %v1394_v8 = vld [vmem:[%s3360_s3 + $0xe0] sm:$0xff] }
 0x471   : > { %2402 = vmatprep.subr.mxu1 %v1009_v11 }
 0x472   : > { %2403 = vmatpush3.msra.mxu1 %v1009_v11  ;;  %v1737_v11 = vld [vmem:[%s3360_s3 + $0x88] sm:$0xff] }
 0x473   : > { %v987_v14 = vpop.permute.xlu0 %986 }
 0x474   : > { %v1004_v15 = vadd.f32 %v987_v14, %v976_v13 }
 0x476   : > { %v1008_v16 = vmax.f32 %v1004_v15, 0.0 }
 0x477   : > { %v1038_v22 = vpop.permute.xlu0 %1037 }
 0x478   : > { %2404 = vmatprep.subr.mxu1 %v1008_v16 }
 0x479   : > { %2405 = vmatpush3.msra.mxu1 %v1008_v16  ;;  %v1033_v25 = vpop.permute.xlu1 %1032  ;;  %v1328_v16 = vsub.s32 5, %v2886_v63 }
 0x47a   : > { %2407 = vmatmul.mubr.msk.f32.vlgmr.msra.gmra.mxu1 %vm400_vm1, %v1013_v17 }
 0x47b   : > { %2409 = vmatprep.mubr.msk.f32.mxu1 %vm400_vm1, %v1014_v19  ;;  %v1028_v29 = vpop.permute.xlu0 %1027  ;;  %v1344_v19 = vsub.s32 6, %v2886_v63 }
 0x47d   : > { %v1023_v33 = vpop.permute.xlu1 %1022 }
 0x47e   : > { %2410 = vmatmul.mubr.msk.f32.gmra.mxu1 %vm400_vm1, %v1015_v18  ;;  %v1329_v18 = vrot.slane %v2897_v2, %v1328_v16 }
 0x47f   : > { %2420 = vmatprep.mubr.msk.f32.mxu1 %vm400_vm1, %v1145_v21  ;;  %v1375_v12 = vpop.permute.xlu0 %1374 }
 0x481   : > { %v1380_v14 = vpop.permute.xlu1 %1379 }
 0x485   : > { %v1370_v17 = vpop.permute.xlu1 %1369 }
 0x53a   : > { %v2408_v27 = vpop.f32.mrf.mxu1 }
 0x53b   : > { %v1124_v31 = vadd.f32 %v2408_v27, %v1028_v29  ;;  %v1345_v27 = vrot.slane %v2897_v2, %v1344_v19  ;;  %v1527_v19 = vld [vmem:[%s3359_s2 + $0x160] sm:$0xff] }
 0x53c   : > { %v1118_v28 = vpop.f32.mrf.mxu1 }
 0x53d   : > { %v1119_v35 = vadd.f32 %v1118_v28, %v1023_v33  ;;  %v1138_v38 = vadd.f32 %v1124_v31, %v2937_v20  ;;  %v1146_v20 = vld [vmem:[%s3359_s2 + $0xe8] sm:$0xff] }
 0x53e   : > { %v2411_v30 = vpop.f32.mrf.mxu1 }
 0x53f   : > { %v1134_v32 = vadd.f32 %v2411_v30, %v1038_v22  ;;  %v1137_v41 = vadd.f32 %v1119_v35, %v2942_v23  ;;  %v1147_v23 = vld [vmem:[%s3359_s2 + $0xf0] sm:$0xff] }
 0x540   : > { %v1128_v34 = vpop.f32.mrf.mxu1 }
 0x541   : > { %v1140_v36 = vadd.f32 %v1134_v32, %v2927_v0  ;;  %v1129_v37 = vadd.f32 %v1128_v34, %v1033_v25  ;;  %v3056_v0 = vmul.f32 %v1138_v38, %v2921_v57 }
 0x543   : > { %v1139_v39 = vadd.f32 %v1129_v37, %v2932_v3  ;;  %v3046_v40 = vmul.f32 %v1140_v36, %v2921_v57  ;;  %v3061_v3 = vmul.f32 %v1137_v41, %v2921_v57 }
 0x545   : > { %2412 = vmatprep.subr.mxu1 %v3046_v40  ;;  %v3051_v42 = vmul.f32 %v1139_v39, %v2921_v57 }
 0x546   : > { %2413 = vmatpush3.msra.mxu1 %v3046_v40 }
 0x547   : > { %2414 = vmatprep.subr.mxu1 %v3051_v42 }
 0x548   : > { %2415 = vmatpush3.msra.mxu1 %v3051_v42 }
 0x549   : > { %2416 = vmatprep.subr.mxu1 %v3056_v0 }
 0x54a   : > { %2417 = vmatpush3.msra.mxu1 %v3056_v0 }
 0x54b   : > { %2418 = vmatprep.subr.mxu1 %v3061_v3 }
 0x54c   : > { %2419 = vmatpush3.msra.mxu1 %v3061_v3 }
 0x54d   : > { %2421 = vmatmul.mubr.msk.f32.vlgmr.msra.gmra.mxu1 %vm400_vm1, %v1146_v20 }
 0x54e   : > { %2423 = vmatprep.mubr.msk.f32.mxu1 %vm400_vm1, %v1147_v23 }
 0x551   : > { %2424 = vmatmul.mubr.msk.f32.gmra.mxu1 %vm400_vm1, %v1148_v44 }
 0x552   : > { %2426 = vmatprep.mubr.msk.f32.mxu1 %vm400_vm1, %v1149_v43 }
 0x555   : > { %2427 = vmatmul.mubr.msk.f32.gmra.mxu1 %vm400_vm1, %v1150_v45 }
 0x556   : > { %2429 = vmatprep.mubr.msk.f32.mxu1 %vm400_vm1, %v1151_v46 }
 0x559   : > { %2430 = vmatmul.mubr.msk.f32.gmra.mxu1 %vm400_vm1, %v1152_v47 }
 0x55a   : > { %2432 = vmatprep.mubr.msk.f32.mxu1 %vm400_vm1, %v1153_v48 }
 0x55d   : > { %2433 = vmatmul.mubr.msk.f32.gmra.mxu1 %vm400_vm1, %v1154_v49 }
 0x55e   : > { %2435 = vmatprep.mubr.msk.f32.mxu1 %vm400_vm1, %v1155_v50 }
 0x561   : > { %2436 = vmatmul.mubr.msk.f32.gmra.mxu1 %vm400_vm1, %v1156_v51 }
 0x60d   : > { %v2422_v52 = vpop.f32.mrf.mxu1 }
 0x60e   : > { %1320 = vrot.lane.b32.xlu1 %v2422_v52, %s2658_s10 }
 0x60f   : > { %v1259_v53 = vpop.f32.mrf.mxu1 }
 0x610   : > { %1318 = vrot.lane.b32.xlu0 %v1259_v53, %s2658_s10 }
 0x611   : > { %v2425_v54 = vpop.f32.mrf.mxu1 }
 0x613   : > { %v1269_v55 = vpop.f32.mrf.mxu1 }
 0x614   : > { %1324 = vrot.lane.b32.xlu0 %v2425_v54, %s2658_s10 }
 0x615   : > { %v2428_v56 = vpop.f32.mrf.mxu1 }
 0x617   : > { %v3110_v58 = vpop.f32.mrf.mxu1 }
 0x618   : > { %1322 = vrot.lane.b32.xlu0 %v1269_v55, %s2658_s10 }
 0x619   : > { %v2431_v59 = vpop.f32.mrf.mxu1 }
 0x61b   : > { %v1289_v60 = vpop.f32.mrf.mxu1 }
 0x61d   : > { %v2434_v61 = vpop.f32.mrf.mxu1 }
 0x61f   : > { %v1299_v62 = vpop.f32.mrf.mxu1 }
 0x621   : > { %v2437_v1 = vpop.f32.mrf.mxu1 }
 0x622   : > { %1340 = vrot.lane.b32.xlu1 %v2437_v1, %s2659_s12 }
 0x623   : > { %v1309_v24 = vpop.f32.mrf.mxu1 }
 0x624   : > { %1338 = vrot.lane.b32.xlu0 %v1309_v24, %s2659_s12 }
 0x626   : > { %1336 = vrot.lane.b32.xlu1 %v2434_v61, %s2659_s12 }
 0x628   : > { %1364 = vperm.xlu0 %2559, %v1358_v26  }
 0x62a   : > { %1334 = vrot.lane.b32.xlu1 %v1299_v62, %s2659_s12 }
 0x62c   : > { %1415 = vperm.xlu0 %2559, %v1397_v5  }
 0x62e   : > { %1410 = vperm.xlu1 %2560, %v1396_v6  }
 0x630   : > { %1405 = vperm.xlu0 %2559, %v1395_v7  }
 0x632   : > { %1400 = vperm.xlu1 %2560, %v1394_v8  }
 0x634   : > { %1752 = vperm.xlu0 %2559, %v1738_v9  }
 0x636   : > { %1757 = vperm.xlu1 %2560, %v1739_v10  }
 0x63a   : > { %1747 = vperm.xlu1 %2560, %v1737_v11  }
 0x680   : > { %v1321_v21 = vpop.permute.xlu1 %1320 }
 0x681   : > { %v1331_v30 = vmul.f32 %v1329_v18, %v1321_v21  ;;  %v1529_v21 = vld [vmem:[%s3359_s2 + $0x170] sm:$0xff] }
 0x682   : > { %v1319_v13 = vpop.permute.xlu0 %1318 }
 0x683   : > { %v1351_v38 = vadd.f32 %v2428_v56, %v1331_v30  ;;  %v1330_v45 = vmul.f32 %v1329_v18, %v1319_v13  ;;  %v1391_v56 = vld [vmem:[%s3359_s2 + $0x1e8] sm:$0xff] }
 0x685   : > { %v1350_v51 = vadd.f32 %v1330_v45, %v3110_v58  ;;  %v1393_v58 = vld [vmem:[%s3359_s2 + $0x1f8] sm:$0xff]  ;;  %v1774_v45 = vld [vmem:[%s3360_s3 + $0x110] sm:$0xff] }
 0x686   : > { %v1325_v15 = vpop.permute.xlu0 %1324 }
 0x687   : > { %v1333_v25 = vmul.f32 %v1329_v18, %v1325_v15 }
 0x689   : > { %v1353_v31 = vadd.f32 %v2431_v59, %v1333_v25  ;;  %v1392_v59 = vld [vmem:[%s3359_s2 + $0x1f0] sm:$0xff]  ;;  %v1531_v25 = vld [vmem:[%s3359_s2 + $0x180] sm:$0xff] }
 0x68a   : > { %v1323_v22 = vpop.permute.xlu0 %1322 }
 0x68b   : > { %v1332_v28 = vmul.f32 %v1329_v18, %v1323_v22  ;;  %v1528_v18 = vld [vmem:[%s3359_s2 + $0x168] sm:$0xff]  ;;  %v1530_v22 = vld [vmem:[%s3359_s2 + $0x178] sm:$0xff] }
 0x68d   : > { %v1352_v34 = vadd.f32 %v1332_v28, %v1289_v60  ;;  %v1523_v60 = vld [vmem:[%s3359_s2 + $0x140] sm:$0xff]  ;;  %v1533_v28 = vld [vmem:[%s3359_s2 + $0x190] sm:$0xff] }
 0x694   : > { %v1341_v29 = vpop.permute.xlu1 %1340 }
 0x695   : > { %v1349_v32 = vmul.f32 %v1345_v27, %v1341_v29  ;;  %v1534_v29 = vld [vmem:[%s3359_s2 + $0x198] sm:$0xff] }
 0x696   : > { %v1339_v33 = vpop.permute.xlu0 %1338 }
 0x697   : > { %v1357_v35 = vadd.f32 %v1353_v31, %v1349_v32  ;;  %v1348_v36 = vmul.f32 %v1345_v27, %v1339_v33 }
 0x698   : > { %v1337_v37 = vpop.permute.xlu1 %1336 }
 0x699   : > { %v1356_v39 = vadd.f32 %v1352_v34, %v1348_v36  ;;  %v1347_v41 = vmul.f32 %v1345_v27, %v1337_v37  ;;  %v1385_v20 = vadd.f32 %v1380_v14, %v1357_v35 }
 0x69b   : > { %v1355_v23 = vadd.f32 %v1351_v38, %v1347_v41  ;;  %v1389_v44 = vmax.f32 %v1385_v20, 0.0  ;;  %v1384_v43 = vadd.f32 %v1375_v12, %v1356_v39 }
 0x69c   : > { %v1335_v46 = vpop.permute.xlu1 %1334 }
 0x69d   : > { %2438 = vmatprep.subr.mxu0 %v1389_v44  ;;  %v1388_v47 = vmax.f32 %v1384_v43, 0.0  ;;  %v1383_v48 = vadd.f32 %v1370_v17, %v1355_v23  ;;  %v1346_v49 = vmul.f32 %v1345_v27, %v1335_v46  ;;  %v1526_v17 = vld [vmem:[%s3359_s2 + $0x158] sm:$0xff]  ;;  %v1532_v27 = vld [vmem:[%s3359_s2 + $0x188] sm:$0xff]  ;;  %v1736_v23 = vld [vmem:[%s3360_s3 + $0x80] sm:$0xff] }
 0x69e   : > { %2439 = vmatpush3.msra.mxu0 %v1389_v44  ;;  %v1768_v44 = vld [vmem:[%s3359_s2 + $0x200] sm:$0xff]  ;;  %v1775_v43 = vld [vmem:[%s3360_s3 + $0x118] sm:$0xff]  ;;  %v1773_v46 = vld [vmem:[%s3360_s3 + $0x108] sm:$0xff] }
 0x69f   : > { %2440 = vmatprep.subr.mxu0 %v1388_v47  ;;  %v1387_v50 = vmax.f32 %v1383_v48, 0.0  ;;  %v1354_v52 = vadd.f32 %v1350_v51, %v1346_v49  ;;  %2486 = vmatprep.mubr.msk.f32.mxu1 %vm400_vm1, %v1768_v44  ;;  %v1902_v48 = vld [vmem:[%s3360_s3 + $0x120] sm:$0xff] }
 0x6a0   : > { %2441 = vmatpush3.msra.mxu0 %v1388_v47  ;;  %v1772_v47 = vld [vmem:[%s3360_s3 + $0x100] sm:$0xff] }
 0x6a1   : > { %2442 = vmatprep.subr.mxu0 %v1387_v50 }
 0x6a2   : > { %2443 = vmatpush3.msra.mxu0 %v1387_v50 }
 0x6a3   : > { %v1365_v53 = vpop.permute.xlu0 %1364 }
 0x6a4   : > { %v1382_v54 = vadd.f32 %v1365_v53, %v1354_v52  ;;  %v1706_v53 = vsub.s32 7, %v2886_v63 }
 0x6a6   : > { %v1386_v55 = vmax.f32 %v1382_v54, 0.0 }
 0x6a7   : > { %v1416_v61 = vpop.permute.xlu0 %1415 }
 0x6a8   : > { %2444 = vmatprep.subr.mxu0 %v1386_v55 }
 0x6a9   : > { %2445 = vmatpush3.msra.mxu0 %v1386_v55  ;;  %v1411_v62 = vpop.permute.xlu1 %1410  ;;  %v1707_v55 = vrot.slane %v2897_v2, %v1706_v53 }
 0x6aa   : > { %2447 = vmatmul.mubr.msk.f32.vlgmr.msra.gmra.mxu0 %vm400_vm1, %v1391_v56 }
 0x6ab   : > { %2449 = vmatprep.mubr.msk.f32.mxu0 %vm400_vm1, %v1392_v59  ;;  %v1406_v26 = vpop.permute.xlu0 %1405 }
 0x6ad   : > { %v1401_v7 = vpop.permute.xlu1 %1400 }
 0x6ae   : > { %2450 = vmatmul.mubr.msk.f32.gmra.mxu0 %vm400_vm1, %v1393_v58 }
 0x6af   : > { %2460 = vmatprep.mubr.msk.f32.mxu0 %vm400_vm1, %v1523_v60  ;;  %v1753_v49 = vpop.permute.xlu0 %1752  ;;  %v2199_v60 = vld [vmem:[%s2893_s6 + $0x8] ss:$0 sm:$0xff]  ;;  %s3295_s6 = scalar_lea.hbm %s3362_s5, %s2214_s16 }
 0x6b1   : > { %v1758_v51 = vpop.permute.xlu1 %1757 }
 0x6b5   : > { %v1748_v54 = vpop.permute.xlu1 %1747 }
 0x76a   : > { %v2448_v1 = vpop.f32.mrf.mxu0 }
 0x76b   : > { %v1502_v5 = vadd.f32 %v2448_v1, %v1406_v26 }
 0x76c   : > { %v1496_v24 = vpop.f32.mrf.mxu0 }
 0x76d   : > { %v1497_v9 = vadd.f32 %v1496_v24, %v1401_v7  ;;  %v1516_v12 = vadd.f32 %v1502_v5, %v3056_v0  ;;  %v1524_v0 = vld [vmem:[%s3359_s2 + $0x148] sm:$0xff] }
 0x76e   : > { %v2451_v4 = vpop.f32.mrf.mxu0 }
 0x76f   : > { %v1512_v6 = vadd.f32 %v2451_v4, %v1416_v61  ;;  %v1515_v15 = vadd.f32 %v1497_v9, %v3061_v3  ;;  %v1525_v3 = vld [vmem:[%s3359_s2 + $0x150] sm:$0xff] }
 0x770   : > { %v1506_v8 = vpop.f32.mrf.mxu0 }
 0x771   : > { %v1518_v10 = vadd.f32 %v1512_v6, %v3046_v40  ;;  %v1507_v11 = vadd.f32 %v1506_v8, %v1411_v62  ;;  %v3175_v40 = vmul.f32 %v1516_v12, %v2921_v57 }
 0x773   : > { %v1517_v13 = vadd.f32 %v1507_v11, %v3051_v42  ;;  %v3165_v14 = vmul.f32 %v1518_v10, %v2921_v57  ;;  %v3180_v42 = vmul.f32 %v1515_v15, %v2921_v57 }
 0x775   : > { %2452 = vmatprep.subr.mxu0 %v3165_v14  ;;  %v3170_v16 = vmul.f32 %v1517_v13, %v2921_v57 }
 0x776   : > { %2453 = vmatpush3.msra.mxu0 %v3165_v14 }
 0x777   : > { %2454 = vmatprep.subr.mxu0 %v3170_v16 }
 0x778   : > { %2455 = vmatpush3.msra.mxu0 %v3170_v16 }
 0x779   : > { %2456 = vmatprep.subr.mxu0 %v3175_v40 }
 0x77a   : > { %2457 = vmatpush3.msra.mxu0 %v3175_v40 }
 0x77b   : > { %2458 = vmatprep.subr.mxu0 %v3180_v42 }
 0x77c   : > { %2459 = vmatpush3.msra.mxu0 %v3180_v42 }
 0x77d   : > { %2461 = vmatmul.mubr.msk.f32.vlgmr.msra.gmra.mxu0 %vm400_vm1, %v1524_v0 }
 0x77e   : > { %2463 = vmatprep.mubr.msk.f32.mxu0 %vm400_vm1, %v1525_v3 }
 0x781   : > { %2464 = vmatmul.mubr.msk.f32.gmra.mxu0 %vm400_vm1, %v1526_v17 }
 0x782   : > { %2466 = vmatprep.mubr.msk.f32.mxu0 %vm400_vm1, %v1527_v19 }
 0x785   : > { %2467 = vmatmul.mubr.msk.f32.gmra.mxu0 %vm400_vm1, %v1528_v18 }
 0x786   : > { %2469 = vmatprep.mubr.msk.f32.mxu0 %vm400_vm1, %v1529_v21 }
 0x789   : > { %2470 = vmatmul.mubr.msk.f32.gmra.mxu0 %vm400_vm1, %v1530_v22 }
 0x78a   : > { %2472 = vmatprep.mubr.msk.f32.mxu0 %vm400_vm1, %v1531_v25 }
 0x78d   : > { %2473 = vmatmul.mubr.msk.f32.gmra.mxu0 %vm400_vm1, %v1532_v27 }
 0x78e   : > { %2475 = vmatprep.mubr.msk.f32.mxu0 %vm400_vm1, %v1533_v28 }
 0x791   : > { %2476 = vmatmul.mubr.msk.f32.gmra.mxu0 %vm400_vm1, %v1534_v29  ;;  %v1769_v29 = vld [vmem:[%s3359_s2 + $0x208] sm:$0xff] }
 0x83d   : > { %v2462_v30 = vpop.f32.mrf.mxu0 }
 0x83e   : > { %1698 = vrot.lane.b32.xlu1 %v2462_v30, %s2660_s17  ;;  %v1770_v30 = vld [vmem:[%s3359_s2 + $0x210] sm:$0xff] }
 0x83f   : > { %v1637_v31 = vpop.f32.mrf.mxu0 }
 0x840   : > { %1696 = vrot.lane.b32.xlu0 %v1637_v31, %s2660_s17  ;;  %v1771_v31 = vld [vmem:[%s3359_s2 + $0x218] sm:$0xff] }
 0x841   : > { %v2465_v32 = vpop.f32.mrf.mxu0 }
 0x843   : > { %v1647_v33 = vpop.f32.mrf.mxu0 }
 0x844   : > { %1702 = vrot.lane.b32.xlu0 %v2465_v32, %s2660_s17  ;;  %v2662_v32 = vmov 0.0  }
 0x845   : > { %v2468_v34 = vpop.f32.mrf.mxu0 }
 0x847   : > { %v3232_v35 = vpop.f32.mrf.mxu0 }
 0x848   : > { %1700 = vrot.lane.b32.xlu0 %v1647_v33, %s2660_s17 }
 0x849   : > { %v2471_v36 = vpop.f32.mrf.mxu0 }
 0x84b   : > { %v1667_v37 = vpop.f32.mrf.mxu0 }
 0x84d   : > { %v2474_v38 = vpop.f32.mrf.mxu0 }
 0x84f   : > { %v1677_v39 = vpop.f32.mrf.mxu0 }
 0x851   : > { %v2477_v41 = vpop.f32.mrf.mxu0 }
 0x852   : > { %1718 = vrot.lane.b32.xlu1 %v2477_v41, %s2661_s23 }
 0x853   : > { %v1687_v20 = vpop.f32.mrf.mxu0 }
 0x854   : > { %1716 = vrot.lane.b32.xlu0 %v1687_v20, %s2661_s23 }
 0x856   : > { %1714 = vrot.lane.b32.xlu1 %v2474_v38, %s2661_s23 }
 0x858   : > { %1742 = vperm.xlu0 %2559, %v1736_v23  }
 0x85a   : > { %1712 = vrot.lane.b32.xlu1 %v1677_v39, %s2661_s23  ;;  %s1993_s23 = scalar_lea.sflag [#allocation5], %s3274_s7 }
 0x85c   : > { %1793 = vperm.xlu0 %2559, %v1775_v43  }
 0x85e   : > { %1788 = vperm.xlu1 %2560, %v1774_v45  }
 0x860   : > { %1783 = vperm.xlu0 %2559, %v1773_v46  }
 0x862   : > { %1778 = vperm.xlu1 %2560, %v1772_v47  }
 0x864   : > { %1905 = vperm.xlu0 %2559, %v1902_v48  }
 0x8b0   : > { %v1699_v56 = vpop.permute.xlu1 %1698 }
 0x8b1   : > { %v1709_v1 = vmul.f32 %v1707_v55, %v1699_v56 }
 0x8b2   : > { %v1697_v50 = vpop.permute.xlu0 %1696 }
 0x8b3   : > { %v1729_v9 = vadd.f32 %v2468_v34, %v1709_v1  ;;  %v1708_v15 = vmul.f32 %v1707_v55, %v1697_v50 }
 0x8b5   : > { %v1728_v21 = vadd.f32 %v1708_v15, %v3232_v35 }
 0x8b6   : > { %v1703_v52 = vpop.permute.xlu0 %1702 }
 0x8b7   : > { %v1711_v58 = vmul.f32 %v1707_v55, %v1703_v52 }
 0x8b9   : > { %v1731_v24 = vadd.f32 %v2471_v36, %v1711_v58 }
 0x8ba   : > { %v1701_v59 = vpop.permute.xlu0 %1700 }
 0x8bb   : > { %v1710_v61 = vmul.f32 %v1707_v55, %v1701_v59 }
 0x8bd   : > { %v1730_v5 = vadd.f32 %v1710_v61, %v1667_v37 }
 0x8c4   : > { %v1719_v62 = vpop.permute.xlu1 %1718 }
 0x8c5   : > { %v1727_v26 = vmul.f32 %v2199_v60, %v1719_v62 }
 0x8c6   : > { %v1717_v4 = vpop.permute.xlu0 %1716 }
 0x8c7   : > { %v1735_v6 = vadd.f32 %v1731_v24, %v1727_v26  ;;  %v1726_v7 = vmul.f32 %v2199_v60, %v1717_v4 }
 0x8c8   : > { %v1715_v8 = vpop.permute.xlu1 %1714 }
 0x8c9   : > { %v1734_v10 = vadd.f32 %v1730_v5, %v1726_v7  ;;  %v1725_v63 = vmul.f32 %v2199_v60, %v1715_v8  ;;  %v1763_v11 = vadd.f32 %v1758_v51, %v1735_v6 }
 0x8cb   : > { %v1733_v12 = vadd.f32 %v1729_v9, %v1725_v63  ;;  %v1767_v2 = vmax.f32 %v1763_v11, 0.0  ;;  %v1762_v13 = vadd.f32 %v1753_v49, %v1734_v10 }
 0x8cc   : > { %v1713_v0 = vpop.permute.xlu1 %1712 }
 0x8cd   : > { %2478 = vmatprep.subr.mxu1 %v1767_v2  ;;  %v1766_v3 = vmax.f32 %v1762_v13, 0.0  ;;  %v1761_v17 = vadd.f32 %v1748_v54, %v1733_v12  ;;  %v1724_v19 = vmul.f32 %v2199_v60, %v1713_v0 }
 0x8ce   : > { %2479 = vmatpush3.msra.mxu1 %v1767_v2 }
 0x8cf   : > { %2480 = vmatprep.subr.mxu1 %v1766_v3  ;;  %v1765_v18 = vmax.f32 %v1761_v17, 0.0  ;;  %v1732_v22 = vadd.f32 %v1728_v21, %v1724_v19 }
 0x8d0   : > { %2481 = vmatpush3.msra.mxu1 %v1766_v3 }
 0x8d1   : > { %2482 = vmatprep.subr.mxu1 %v1765_v18 }
 0x8d2   : > { %2483 = vmatpush3.msra.mxu1 %v1765_v18 }
 0x8d3   : > { %v1743_v25 = vpop.permute.xlu0 %1742 }
 0x8d4   : > { %v1760_v27 = vadd.f32 %v1743_v25, %v1732_v22 }
 0x8d6   : > { %v1764_v28 = vmax.f32 %v1760_v27, 0.0 }
 0x8d7   : > { %v1794_v33 = vpop.permute.xlu0 %1793 }
 0x8d8   : > { %2484 = vmatprep.subr.mxu1 %v1764_v28 }
 0x8d9   : > { %2485 = vmatpush3.msra.mxu1 %v1764_v28  ;;  %v1789_v34 = vpop.permute.xlu1 %1788 }
 0x8da   : > { %2487 = vmatmul.mubr.msk.f32.vlgmr.msra.gmra.mxu1 %vm400_vm1, %v1769_v29  ;;  %2492 = vmatprep.subr.mxu1 %v2662_v32 }
 0x8db   : > { %2489 = vmatprep.mubr.msk.f32.mxu1 %vm400_vm1, %v1770_v30  ;;  %v1784_v35 = vpop.permute.xlu0 %1783 }
 0x8dd   : > { %v1779_v38 = vpop.permute.xlu1 %1778 }
 0x8de   : > { %2490 = vmatmul.mubr.msk.f32.gmra.mxu1 %vm400_vm1, %v1771_v31 }
 0x8df   : > { %2500 = vmatprep.mubr.msk.f32.mxu1 %vm2663_vm2, %v2662_v32 }
 0x99a   : > { %v2488_v36 = vpop.f32.mrf.mxu1 }
 0x99b   : > { %v1880_v37 = vadd.f32 %v2488_v36, %v1784_v35 }
 0x99c   : > { %v1874_v39 = vpop.f32.mrf.mxu1 }
 0x99d   : > { %v1894_v41 = vadd.f32 %v1880_v37, %v3175_v40  ;;  %v1875_v20 = vadd.f32 %v1874_v39, %v1779_v38 }
 0x99e   : > { %v2491_v23 = vpop.f32.mrf.mxu1 }
 0x99f   : > { %v1898_v44 = vmul.f32 %v1894_v41, %v2921_v57  ;;  %v1893_v43 = vadd.f32 %v1875_v20, %v3180_v42  ;;  %v1890_v45 = vadd.f32 %v2491_v23, %v1794_v33 }
 0x9a0   : > { %v1884_v46 = vpop.f32.mrf.mxu1 }
 0x9a1   : > { %1984 = vst [vmem:[%s243_s9 + $0x8] sm:$0xff] %v1898_v44  ;;  %v1897_v47 = vmul.f32 %v1893_v43, %v2921_v57  ;;  %v1896_v48 = vadd.f32 %v1890_v45, %v3165_v14  ;;  %v1885_v49 = vadd.f32 %v1884_v46, %v1789_v34  ;;  %v1901_v14 = vld [vmem:[%s3359_s2 + $0x220] sm:$0xff] }
 0x9a3   : > { %1983 = vst [vmem:[%s243_s9] sm:$0xff] %v1897_v47  ;;  %v1900_v50 = vmul.f32 %v1896_v48, %v2921_v57  ;;  %v1895_v40 = vadd.f32 %v1885_v49, %v3170_v16 }
 0x9a5   : > { %1986 = vst [vmem:[%s243_s9 + $0x18] sm:$0xff] %v1900_v50  ;;  %v1899_v51 = vmul.f32 %v1895_v40, %v2921_v57  ;;  %2493 = vmatpush3.msra.mxu1 %v1900_v50 }
 0x9a6   : > { %2494 = vmatprep.subr.mxu1 %v2662_v32 }
 0x9a7   : > { %1985 = vst [vmem:[%s243_s9 + $0x10] sm:$0xff] %v1899_v51  ;;  %2495 = vmatpush3.msra.mxu1 %v1899_v51 }
 0x9a8   : > { %2496 = vmatprep.subr.mxu1 %v2662_v32 }
 0x9a9   : > { %2497 = vmatpush3.msra.mxu1 %v1898_v44 }
 0x9aa   : > { %2498 = vmatprep.subr.mxu1 %v2662_v32 }
 0x9ab   : > { %2499 = vmatpush3.msra.mxu1 %v1897_v47 }
 0x9ac   : > { %2501 = vmatmul.mubr.msk.f32.vlgmr.msra.gmra.mxu1 %vm400_vm1, %v1901_v14 }
 0x9ad   : > { %2574 = shalt.err (!%p2571_p3)
}
 0x9ae   : > { %s2575_s8 = scalar_lea.hbm %s3295_s6, 512  ;;  %s2579_s12 = scalar_lea.hbm %s3362_s5, 1024 }
 0x9af   : > { %p2576_p4 = scmp.ne.s32.totalorder %s3295_s6, %s2575_s8  ;;  %p2580_p9 = scmp.lt.s32.totalorder %s3295_s6, %s3362_s5 }
 0x9b0   : > { %p2581_p10 = scmp.lt.s32.totalorder %s2579_s12, %s2575_s8 }
 0x9b1   : > { %p2577_p7 = pnand %p2576_p4, %p2735_p5 }
 0x9b2   : > { %p2582_p11 = por %p2581_p10, %p2580_p9 }
 0x9b3   : > { %p2578_p8 = pneg %p2577_p7 }
 0x9b5   : > { %p2583_p12 = pnand %p2582_p11, %p2578_p8 }
 0x9b7   : > { %2586 = shalt.err (!%p2583_p12)
}
 0x9b8   : > { %s2665_s25 = smov 128   ;;  %s2129_s26 = sshll.u32 %s3274_s7, 3  ;;  %v1906_v16 = vpop.permute.xlu0 %1905 }
 0x9b9   : > { %2504 = dma.vmem_to_hbm [thread:$0]  (%p2735_p5), %s3289_s13, 512, %s3295_s6, %s1993_s23, %s2665_s25, %s2665_s25, %s2660_s17  }
 0x9ba   : > { %s2207_s30 = sshll.u32 %s2718_s22, 7  ;;  %s236_s11 = scalar_lea.vmem [#allocation2], %s2129_s26 }
 0x9bb   : > { %s2006_s14 = sshll.u32 %s236_s11, 4  ;;  %s2004_s10 = scalar_lea.hbm %s3361_s4, %s2207_s30  ;;  %s2007_s14 = int_to_ptr.vmem [resolvable:$true] %s2006_s14 }
 0x9bc   : > { %s1988_s12 = scalar_lea.sflag [#allocation3], %s3274_s7  ;;  %s2587_s16 = scalar_lea.vmem %s2007_s14, 128 }
 0x9bd   : > { %p2588_p13 = scmp.ne.s32.totalorder %s2007_s14, %s2587_s16  ;;  %s2666_s17 = smov [#allocation2]  }
 0x9be   : > { %s2591_s22 = sshll.u32 %s2666_s17, 4  ;;  %s2592_s22 = int_to_ptr.vmem [resolvable:$false] %s2591_s22 }
 0x9bf   : > { %p2589_p0 = pnand %p2588_p13, %p2735_p5  ;;  %s2593_s13 = scalar_lea.vmem %s2592_s22, 256 }
 0x9c0   : > { %p2594_p2 = scmp.lt.s32.totalorder %s2007_s14, %s2592_s22  ;;  %p2595_p3 = scmp.lt.s32.totalorder %s2593_s13, %s2587_s16 }
 0x9c1   : > { %p2590_p1 = pneg %p2589_p0 }
 0x9c2   : > { %p2596_p4 = por %p2595_p3, %p2594_p2 }
 0x9c4   : > { %p2597_p7 = pnand %p2596_p4, %p2590_p1 }
 0xa6c   : > { %v1977_v42 = vpop.f32.mrf.mxu1 }
 0xa6d   : > { %v1978_v52 = vadd.f32 %v1977_v42, %v1906_v16 }
 0xa6e   : > { %v2502_v53 = vpop.f32.mrf.mxu1 }
 0xa6f   : > { %v1981_v54 = vmul.f32 %v1978_v52, %v2921_v57 }
 0xa71   : > { %1982 = vst [vmem:[%s236_s11] sm:$0xff] %v1981_v54 }
 0xa72   : > { %2600 = shalt.err (!%p2597_p7)
}
 0xa73   : > { %s2601_s6 = scalar_lea.hbm %s2004_s10, 128  ;;  %s2605_s15 = scalar_lea.hbm %s3361_s4, 256 }
 0xa74   : > { %p2602_p8 = scmp.ne.s32.totalorder %s2004_s10, %s2601_s6  ;;  %p2606_p11 = scmp.lt.s32.totalorder %s2004_s10, %s3361_s4 }
 0xa75   : > { %p2607_p12 = scmp.lt.s32.totalorder %s2605_s15, %s2601_s6 }
 0xa76   : > { %p2603_p9 = pnand %p2602_p8, %p2735_p5 }
 0xa77   : > { %p2608_p13 = por %p2607_p12, %p2606_p11 }
 0xa78   : > { %p2604_p10 = pneg %p2603_p9 }
 0xa7a   : > { %p2609_p0 = pnand %p2608_p13, %p2604_p10 }
 0xa7c   : > { %2612 = shalt.err (!%p2609_p0)
}
 0xa7d   : > { %2503 = dma.vmem_to_hbm [thread:$0]  (%p2735_p5), %s2007_s14, 128, %s2004_s10, %s1988_s12  }
 0xa7e PF: > { %p2514_p1 = scmp.ge.s32.totalorder %s2651_s21, 2  ;;  %s2034_s30 = sand.u32 1, %s2639_s18  }
 0xa7f   : > { %s2035_s11 = scalar_lea.sflag [#allocation3], %s2034_s30 }
 0xa80   : > { %p2508_p2 = pnand %p2514_p1, %p2739_p6 }
 0xa82   : > { %p2509_p3 = pneg %p2508_p2 }
 0xa84   : > { %2630 = dma.done.wait (%p2509_p3), %s2035_s11, 128  }
 0xa85   : > { %2632 = vsyncadd (%p2509_p3), %s2035_s11, 4294967168  ;;  %s2044_s8 = scalar_lea.sflag [#allocation5], %s2034_s30 }
 0xa86   : > { %2634 = dma.done.wait (%p2509_p3), %s2044_s8, 512  }
 0xa87   : > { %2636 = vsyncadd (%p2509_p3), %s2044_s8, 4294966784  ;;  %p19_p5 = scmp.ge.s32.totalorder %s2722_s24, 4   ;;  %s3365_s18 = smov %s2643_s19 }
 0xa88   : > { %s3366_s19 = smov %s2647_s20  ;;  %s3367_s20 = smov %s2733_s27 }
 0xa89   : > { %s3368_s21 = smov %s2722_s24  ;;  %21 = sbr.rel (!%p19_p5) target bundleno = 5 (0x5), region = 91 }
 0xa8e   :  { %2049 = vsyncpa [#allocation3], 1 }
 0xa8f   :  { %2051 = vsyncpa [#allocation3 + $0x1], 1 }
 0xa90   :  { %2052 = vsyncpa [#allocation5], 1 }
 0xa91   :  { %2054 = vsyncpa [#allocation5 + $0x1], 1 }

</bundles_post_ra>
